<compile_context>
chip_gen: v5e
topology: v5e:2x2
jax: 0.10.0
libtpu: 0.0.40
codegen_flags: <defaults>
</compile_context>

<pallas_src>
import functools

import jax
import jax.numpy as jnp
import numpy as np
from jax.experimental import pallas as pl
from jax.experimental.pallas import tpu as pltpu

LANE = 128


# ---------------------------------------------------------------------------
# Pallas kernel: fused multi-dilation 3x3 conv head
# (one grid step = one batch element x one output-row band)
# ---------------------------------------------------------------------------
def _classifier_kernel(x_ref, w_ref, b_ref, o_ref, *, taps, th, w_out, cin):
    """
    x_ref : (1, H_p, W_p, Cin)     bf16  zero-padded input image (whole image)
    w_ref : (K, CoutP)             bf16  tap-stacked weights, K = n_taps*Cin
    b_ref : (1, CoutP)             f32   folded (conv0 + conv1) bias, padded
    o_ref : (1, TH*W_out, CoutP)   bf16  output band (lane-dense)
    taps  : static tuple of (dy, dx) window offsets into the padded image
    """
    # First output row of this band (band axis = grid axis 1).
    row0 = pl.multiple_of(pl.program_id(1) * th, th)

    # Load each distinct row-band of the padded image once, straight from the
    # ref (no whole-image hoist); slice the per-tap windows from those values.
    rows = {}                                    # dy -> (TH, W_p, Cin) bf16 value
    wins = []
    for dy, dx in taps:
        if dy not in rows:
            rows[dy] = x_ref[0, pl.ds(row0 + dy, th), :, :]
        wins.append(rows[dy][:, dx:dx + w_out, :])     # (TH, W_out, Cin)

    # Pack all taps into the contraction dim: (TH*W_out, n_taps*Cin).
    n_taps = len(taps)
    patch = jnp.concatenate(wins, axis=-1).reshape(th * w_out, n_taps * cin)

    # Single MXU matmul with deep K; f32 accumulation; bias folded into the
    # same finalize; one lane-dense bf16 store.
    acc = jnp.dot(patch, w_ref[...], preferred_element_type=jnp.float32)
    o_ref[0] = (acc + b_ref[...]).astype(o_ref.dtype)


def _pick_band_rows(h_out):
    """Output rows per band: a clean divisor of H_out giving >=2 grid steps
    per image where possible (feeds both v7x TensorCores / the pipeline)."""
    for th in (8, 16, 4, 32, 2, 64, 1):
        if th <= h_out and h_out % th == 0:
            return th
    return h_out


# ---------------------------------------------------------------------------
# Wrapper (layout prep, weight/bias folding, pallas_call)
# ---------------------------------------------------------------------------
def classifier_module_forward(x_nchw, weights, biases, dilations, paddings):
    """Literal Classifier_Module.forward. weights[i]: (num_classes, Cin, 3, 3) OIHW."""
    n_convs = len(weights)
    if n_convs < 2:
        # TODO(synk): with a single conv the PyTorch forward's loop never runs
        # and the function returns None; mirror that corner case rather than guess.
        return None
    active = (0, 1)  # early `return` inside the loop => only conv0 + conv1 contribute

    N, Cin, H, W = x_nchw.shape
    num_classes = weights[0].shape[0]

    # Output spatial size for k=3, stride=1: H + 2p - 2d (must agree across the
    # contributing convs for the module's `out += conv_i(x)` to be well-defined).
    h_outs = {H + 2 * paddings[i] - 2 * dilations[i] for i in active}
    w_outs = {W + 2 * paddings[i] - 2 * dilations[i] for i in active}
    assert len(h_outs) == 1 and len(w_outs) == 1, "mismatched conv output sizes"
    H_out, W_out = h_outs.pop(), w_outs.pop()
    HW = H_out * W_out

    # --- activation prep: NCHW -> NHWC, single zero-pad, bf16 ---
    x = jnp.transpose(x_nchw, (0, 2, 3, 1))                      # (N, H, W, Cin)
    ppad = max(paddings[i] for i in active)
    xp = jnp.pad(x, ((0, 0), (ppad, ppad), (ppad, ppad), (0, 0))).astype(jnp.bfloat16)
    H_p, W_p = H + 2 * ppad, W + 2 * ppad

    # --- weight / bias prep: tap-stacked (K, CoutP) slab, class dim padded to 128 ---
    cout_p = ((num_classes + LANE - 1) // LANE) * LANE
    taps, w_slabs = [], []
    for i in active:
        d, p = dilations[i], paddings[i]
        w_oihw = weights[i]                                      # (Cout, Cin, 3, 3)
        for ky in range(3):
            for kx in range(3):
                taps.append((ppad - p + ky * d, ppad - p + kx * d))
                wt = jnp.transpose(w_oihw[:, :, ky, kx], (1, 0))  # (Cin, Cout)
                w_slabs.append(jnp.pad(wt, ((0, 0), (0, cout_p - num_classes))))
    w_all = jnp.concatenate(w_slabs, axis=0).astype(jnp.bfloat16)  # (K, CoutP)
    K = len(taps) * Cin
    bias = (biases[active[0]] + biases[active[1]]).astype(jnp.float32)
    bias = jnp.pad(bias, (0, cout_p - num_classes)).reshape(1, cout_p)

    # --- band split over output rows (second "parallel" grid axis) ---
    TH = _pick_band_rows(H_out)
    NB = H_out // TH

    kernel = functools.partial(_classifier_kernel, taps=tuple(taps),
                               th=TH, w_out=W_out, cin=Cin)

    # Honest scheduler hint: unpadded classes, only the taps actually executed.
    flops = 2 * N * HW * K * num_classes
    bytes_accessed = (N * H_p * W_p * Cin * 2          # bf16 activations
                      + K * num_classes * 2            # bf16 weights
                      + num_classes * 4                # f32 bias
                      + N * HW * num_classes * 2)      # bf16 output

    out = pl.pallas_call(
        kernel,
        out_shape=jax.ShapeDtypeStruct((N, HW, cout_p), jnp.bfloat16),
        grid=(N, NB),
        in_specs=[
            # whole padded image per batch element (block index constant in the
            # band axis -> fetched once per image by the pipeline)
            pl.BlockSpec((1, H_p, W_p, Cin), lambda n, j: (n, 0, 0, 0)),
            # resident tap-stacked weights (constant index map)
            pl.BlockSpec((K, cout_p), lambda n, j: (0, 0)),
            # folded bias
            pl.BlockSpec((1, cout_p), lambda n, j: (0, 0)),
        ],
        out_specs=pl.BlockSpec((1, TH * W_out, cout_p), lambda n, j: (n, j, 0)),
        compiler_params=pltpu.CompilerParams(
            dimension_semantics=("parallel", "parallel"),
            # explicit scoped-VMEM budget (raised from the v5e 16 MiB default);
            # plenty for the small blocks here.
            vmem_limit_bytes=32 * 1024 * 1024,
        ),
        cost_estimate=pl.CostEstimate(flops=flops, transcendentals=0,
                                      bytes_accessed=bytes_accessed),
    )(xp, w_all, bias)

    # Output kept bf16 (halves HBM writeback); upcast outside if downstream
    # needs f32.
    out = out[:, :, :num_classes].reshape(N, H_out, W_out, num_classes)
    return jnp.transpose(out, (0, 3, 1, 2))                     # NHWC -> NCHW


# ---------------------------------------------------------------------------
# Pure-JAX reference (literal translation of the PyTorch forward)
# ---------------------------------------------------------------------------
def ref_forward(x, weights, biases, dilations, paddings):
    def conv(x, w, b, d, p):
        y = jax.lax.conv_general_dilated(
            x, w, window_strides=(1, 1), padding=[(p, p), (p, p)],
            rhs_dilation=(d, d), dimension_numbers=("NCHW", "OIHW", "NCHW"))
        return y + b[None, :, None, None]

    out = conv(x, weights[0], biases[0], dilations[0], paddings[0])
    for i in range(len(weights) - 1):
        out = out + conv(x, weights[i + 1], biases[i + 1],
                         dilations[i + 1], paddings[i + 1])
        return out  # same early return as the module
    return None


# ---------------------------------------------------------------------------
if __name__ == "__main__":
    # Small shapes consistent with the module: Classifier_Module(inplanes=16,
    # dilation_series=[6,12,18,24], padding_series=[6,12,18,24], num_classes=21)
    # applied to a (2, 16, 16, 16) NCHW feature map.
    N, Cin, H, W = 2, 16, 16, 16
    num_classes = 21
    dilation_series = [6, 12, 18, 24]
    padding_series = [6, 12, 18, 24]

    keys = jax.random.split(jax.random.PRNGKey(0), 2 * len(dilation_series) + 1)
    weights, biases = [], []
    for i in range(len(dilation_series)):
        # matches m.weight.data.normal_(0, 0.01)
        weights.append(jax.random.normal(
            keys[2 * i], (num_classes, Cin, 3, 3), jnp.float32) * 0.01)
        biases.append(jax.random.normal(
            keys[2 * i + 1], (num_classes,), jnp.float32) * 0.01)
    x = jax.random.normal(keys[-1], (N, Cin, H, W), jnp.float32)

    out = jax.block_until_ready(
        classifier_module_forward(x, weights, biases, dilation_series, padding_series))
    ref = jax.block_until_ready(
        ref_forward(x, weights, biases, dilation_series, padding_series))

    assert out.shape == (N, num_classes, H, W), out.shape
    # bf16 MXU feeds + bf16 output store (f32 accumulation) -> loosened tolerance
    # vs the f32 reference.
    out_f32 = np.asarray(jnp.asarray(out, jnp.float32))
    np.testing.assert_allclose(out_f32, np.asarray(ref), rtol=2e-2, atol=2e-2)
    print("KERNEL_OK")
</pallas_src>

<mosaic_0001>
module attributes {stable_mosaic.version = 11 : i64} {
  func.func @_classifier_kernel(%arg0: i32, %arg1: i32, %arg2: memref<1x40x40x16xbf16, #tpu.memory_space<vmem>>, %arg3: memref<288x128xbf16, #tpu.memory_space<vmem>>, %arg4: memref<1x128xf32, #tpu.memory_space<vmem>>, %arg5: memref<1x128x128xbf16, #tpu.memory_space<vmem>>) attributes {dimension_semantics = [#tpu.dimension_semantics<parallel>, #tpu.dimension_semantics<parallel>], iteration_bounds = array<i64: 2, 2>, scalar_prefetch = 0 : i64, scratch_operands = 0 : i64, tpu.core_type = #tpu.core_type<tc>, window_params = [{transform_indices = @transform_0, window_bounds = array<i64: 1, 40, 40, 16>}, {pipeline_mode = #tpu.pipeline_mode<synchronous>, transform_indices = @transform_1, window_bounds = array<i64: 288, 128>}, {pipeline_mode = #tpu.pipeline_mode<synchronous>, transform_indices = @transform_2, window_bounds = array<i64: 1, 128>}, {transform_indices = @transform_3, window_bounds = array<i64: 1, 128, 128>}]} {
    %c8_i32 = arith.constant 8 : i32
    %0 = arith.muli %arg1, %c8_i32 : i32
    %1 = tpu.assume_multiple %0, 8 : i32
    %c6_i32 = arith.constant 6 : i32
    %2 = arith.addi %1, %c6_i32 : i32
    %c0 = arith.constant 0 : index
    %3 = arith.index_cast %2 : i32 to index
    %c0_0 = arith.constant 0 : index
    %c0_1 = arith.constant 0 : index
    %4 = vector.load %arg2[%c0, %3, %c0_0, %c0_1] : memref<1x40x40x16xbf16, #tpu.memory_space<vmem>>, vector<1x8x40x16xbf16>
    %5 = vector.shape_cast %4 : vector<1x8x40x16xbf16> to vector<8x40x16xbf16>
    %6 = vector.extract_strided_slice %5 {offsets = [0, 6, 0], sizes = [8, 16, 16], strides = [1, 1, 1]} : vector<8x40x16xbf16> to vector<8x16x16xbf16>
    %7 = vector.extract_strided_slice %5 {offsets = [0, 12, 0], sizes = [8, 16, 16], strides = [1, 1, 1]} : vector<8x40x16xbf16> to vector<8x16x16xbf16>
    %8 = vector.extract_strided_slice %5 {offsets = [0, 18, 0], sizes = [8, 16, 16], strides = [1, 1, 1]} : vector<8x40x16xbf16> to vector<8x16x16xbf16>
    %c12_i32 = arith.constant 12 : i32
    %9 = arith.addi %1, %c12_i32 : i32
    %c0_2 = arith.constant 0 : index
    %10 = arith.index_cast %9 : i32 to index
    %c0_3 = arith.constant 0 : index
    %c0_4 = arith.constant 0 : index
    %11 = vector.load %arg2[%c0_2, %10, %c0_3, %c0_4] : memref<1x40x40x16xbf16, #tpu.memory_space<vmem>>, vector<1x8x40x16xbf16>
    %12 = vector.shape_cast %11 : vector<1x8x40x16xbf16> to vector<8x40x16xbf16>
    %13 = vector.extract_strided_slice %12 {offsets = [0, 6, 0], sizes = [8, 16, 16], strides = [1, 1, 1]} : vector<8x40x16xbf16> to vector<8x16x16xbf16>
    %14 = vector.extract_strided_slice %12 {offsets = [0, 12, 0], sizes = [8, 16, 16], strides = [1, 1, 1]} : vector<8x40x16xbf16> to vector<8x16x16xbf16>
    %15 = vector.extract_strided_slice %12 {offsets = [0, 18, 0], sizes = [8, 16, 16], strides = [1, 1, 1]} : vector<8x40x16xbf16> to vector<8x16x16xbf16>
    %c18_i32 = arith.constant 18 : i32
    %16 = arith.addi %1, %c18_i32 : i32
    %c0_5 = arith.constant 0 : index
    %17 = arith.index_cast %16 : i32 to index
    %c0_6 = arith.constant 0 : index
    %c0_7 = arith.constant 0 : index
    %18 = vector.load %arg2[%c0_5, %17, %c0_6, %c0_7] : memref<1x40x40x16xbf16, #tpu.memory_space<vmem>>, vector<1x8x40x16xbf16>
    %19 = vector.shape_cast %18 : vector<1x8x40x16xbf16> to vector<8x40x16xbf16>
    %20 = vector.extract_strided_slice %19 {offsets = [0, 6, 0], sizes = [8, 16, 16], strides = [1, 1, 1]} : vector<8x40x16xbf16> to vector<8x16x16xbf16>
    %21 = vector.extract_strided_slice %19 {offsets = [0, 12, 0], sizes = [8, 16, 16], strides = [1, 1, 1]} : vector<8x40x16xbf16> to vector<8x16x16xbf16>
    %22 = vector.extract_strided_slice %19 {offsets = [0, 18, 0], sizes = [8, 16, 16], strides = [1, 1, 1]} : vector<8x40x16xbf16> to vector<8x16x16xbf16>
    %c0_i32 = arith.constant 0 : i32
    %23 = arith.addi %1, %c0_i32 : i32
    %c0_8 = arith.constant 0 : index
    %24 = arith.index_cast %23 : i32 to index
    %c0_9 = arith.constant 0 : index
    %c0_10 = arith.constant 0 : index
    %25 = vector.load %arg2[%c0_8, %24, %c0_9, %c0_10] : memref<1x40x40x16xbf16, #tpu.memory_space<vmem>>, vector<1x8x40x16xbf16>
    %26 = vector.shape_cast %25 : vector<1x8x40x16xbf16> to vector<8x40x16xbf16>
    %27 = vector.extract_strided_slice %26 {offsets = [0, 0, 0], sizes = [8, 16, 16], strides = [1, 1, 1]} : vector<8x40x16xbf16> to vector<8x16x16xbf16>
    %28 = vector.extract_strided_slice %26 {offsets = [0, 12, 0], sizes = [8, 16, 16], strides = [1, 1, 1]} : vector<8x40x16xbf16> to vector<8x16x16xbf16>
    %29 = vector.extract_strided_slice %26 {offsets = [0, 24, 0], sizes = [8, 16, 16], strides = [1, 1, 1]} : vector<8x40x16xbf16> to vector<8x16x16xbf16>
    %30 = vector.extract_strided_slice %12 {offsets = [0, 0, 0], sizes = [8, 16, 16], strides = [1, 1, 1]} : vector<8x40x16xbf16> to vector<8x16x16xbf16>
    %31 = vector.extract_strided_slice %12 {offsets = [0, 12, 0], sizes = [8, 16, 16], strides = [1, 1, 1]} : vector<8x40x16xbf16> to vector<8x16x16xbf16>
    %32 = vector.extract_strided_slice %12 {offsets = [0, 24, 0], sizes = [8, 16, 16], strides = [1, 1, 1]} : vector<8x40x16xbf16> to vector<8x16x16xbf16>
    %c24_i32 = arith.constant 24 : i32
    %33 = arith.addi %1, %c24_i32 : i32
    %c0_11 = arith.constant 0 : index
    %34 = arith.index_cast %33 : i32 to index
    %c0_12 = arith.constant 0 : index
    %c0_13 = arith.constant 0 : index
    %35 = vector.load %arg2[%c0_11, %34, %c0_12, %c0_13] : memref<1x40x40x16xbf16, #tpu.memory_space<vmem>>, vector<1x8x40x16xbf16>
    %36 = vector.shape_cast %35 : vector<1x8x40x16xbf16> to vector<8x40x16xbf16>
    %37 = vector.extract_strided_slice %36 {offsets = [0, 0, 0], sizes = [8, 16, 16], strides = [1, 1, 1]} : vector<8x40x16xbf16> to vector<8x16x16xbf16>
    %38 = vector.extract_strided_slice %36 {offsets = [0, 12, 0], sizes = [8, 16, 16], strides = [1, 1, 1]} : vector<8x40x16xbf16> to vector<8x16x16xbf16>
    %39 = vector.extract_strided_slice %36 {offsets = [0, 24, 0], sizes = [8, 16, 16], strides = [1, 1, 1]} : vector<8x40x16xbf16> to vector<8x16x16xbf16>
    %40 = tpu.concatenate %6, %7, %8, %13, %14, %15, %20, %21, %22, %27, %28, %29, %30, %31, %32, %37 in 2 : vector<8x16x16xbf16>, vector<8x16x16xbf16>, vector<8x16x16xbf16>, vector<8x16x16xbf16>, vector<8x16x16xbf16>, vector<8x16x16xbf16>, vector<8x16x16xbf16>, vector<8x16x16xbf16>, vector<8x16x16xbf16>, vector<8x16x16xbf16>, vector<8x16x16xbf16>, vector<8x16x16xbf16>, vector<8x16x16xbf16>, vector<8x16x16xbf16>, vector<8x16x16xbf16>, vector<8x16x16xbf16> -> vector<8x16x256xbf16>
    %41 = tpu.concatenate %38, %39 in 2 : vector<8x16x16xbf16>, vector<8x16x16xbf16> -> vector<8x16x32xbf16>
    %42 = tpu.concatenate %40, %41 in 2 : vector<8x16x256xbf16>, vector<8x16x32xbf16> -> vector<8x16x288xbf16>
    %43 = vector.shape_cast %42 : vector<8x16x288xbf16> to vector<128x288xbf16>
    %c0_14 = arith.constant 0 : index
    %c0_15 = arith.constant 0 : index
    %44 = vector.load %arg3[%c0_14, %c0_15] : memref<288x128xbf16, #tpu.memory_space<vmem>>, vector<288x128xbf16>
    %cst = arith.constant dense<0.000000e+00> : vector<128x128xf32>
    %45 = tpu.matmul %43, %44, %cst {dimension_numbers = #tpu.dot_dimension_numbers<[1], [0], [0], [1], [0, 0, 1, 1], [], []>} : vector<128x288xbf16>, vector<288x128xbf16>, vector<128x128xf32> -> vector<128x128xf32>
    %c0_16 = arith.constant 0 : index
    %c0_17 = arith.constant 0 : index
    %46 = vector.load %arg4[%c0_16, %c0_17] : memref<1x128xf32, #tpu.memory_space<vmem>>, vector<1x128xf32>
    %47 = vector.broadcast %46 : vector<1x128xf32> to vector<128x128xf32>
    %48 = arith.addf %45, %47 : vector<128x128xf32>
    %49 = arith.truncf %48 : vector<128x128xf32> to vector<128x128xbf16>
    %c0_18 = arith.constant 0 : index
    %c0_19 = arith.constant 0 : index
    %c0_20 = arith.constant 0 : index
    %50 = vector.load %arg5[%c0_18, %c0_19, %c0_20] : memref<1x128x128xbf16, #tpu.memory_space<vmem>>, vector<1x128x128xbf16>
    %51 = vector.shape_cast %50 : vector<1x128x128xbf16> to vector<128x128xbf16>
    %52 = vector.shape_cast %49 : vector<128x128xbf16> to vector<1x128x128xbf16>
    tpu.vector_store %arg5[%c0_18, %c0_19, %c0_20], %52 {strides = array<i32>} : memref<1x128x128xbf16, #tpu.memory_space<vmem>>, vector<1x128x128xbf16>,
    return
  }
  func.func @transform_0(%arg0: i32, %arg1: i32) -> (i32, i32, i32, i32) {
    %c0_i32 = arith.constant 0 : i32
    %c0_i32_0 = arith.constant 0 : i32
    %c0_i32_1 = arith.constant 0 : i32
    %c0_i32_2 = arith.constant 0 : i32
    return %arg0, %c0_i32, %c0_i32_0, %c0_i32_1 : i32, i32, i32, i32
  }
  func.func @transform_1(%arg0: i32, %arg1: i32) -> (i32, i32) {
    %c0_i32 = arith.constant 0 : i32
    %c0_i32_0 = arith.constant 0 : i32
    %c0_i32_1 = arith.constant 0 : i32
    return %c0_i32, %c0_i32_0 : i32, i32
  }
  func.func @transform_2(%arg0: i32, %arg1: i32) -> (i32, i32) {
    %c0_i32 = arith.constant 0 : i32
    %c0_i32_0 = arith.constant 0 : i32
    %c0_i32_1 = arith.constant 0 : i32
    return %c0_i32, %c0_i32_0 : i32, i32
  }
  func.func @transform_3(%arg0: i32, %arg1: i32) -> (i32, i32, i32) {
    %c0_i32 = arith.constant 0 : i32
    %c0_i32_0 = arith.constant 0 : i32
    return %arg0, %arg1, %c0_i32 : i32, i32, i32
  }
}

</mosaic_0001>

<bundles_post_ra>
// kernel: tpu_custom_call.1
= control target key start
LH: loop header
LB: loop body
LE: loop exit
PB: predicated region body
PF: predicated region fallthrough
CT: control target
= control target key end

     0   :  { %8 = vsyncpa [#allocation3], 0  ;;  %s5655_s0 = inlined_call_operand.vmem [shape: bf16[2,40,40,16], index: 0, kind: input, shape index: {}]   ;;  %s5656_s1 = inlined_call_operand.vmem [shape: bf16[288,128], index: 1, kind: input, shape index: {}]   ;;  %s5657_s2 = inlined_call_operand.vmem [shape: f32[1,128], index: 2, kind: input, shape index: {}]   ;;  %s5658_s3 = inlined_call_operand.hbm [shape: bf16[2,256,128], index: 3, kind: output, shape index: {}]  }
   0x1   :  { %10 = vsyncpa [#allocation3 + $0x1], 0  ;;  %s3996_s12 = smov 0   ;;  %s3998_s13 = smov 0  }
   0x2   :  { %s4000_s14 = smov 0   ;;  %s4002_s15 = smov 0  }
   0x3   :  { %s4004_s16 = smov 0   ;;  %s4006_s17 = smov 0  }
   0x4   :  { %s4008_s18 = smov 0   ;;  %s4010_s19 = smov 0  }
   0x5 LB: > { %s2734_s20 = sadd.s32 4294967295, %s3966_s19   ;;  %s2735_s21 = sadd.s32 4294967294, %s3966_s19   ;;  %s3966_s19 = sphi %s4010_s19, %s16_s19   ;;  %s3962_s18 = sphi %s4008_s18, %s5789_s18   ;;  %s3958_s17 = sphi %s4006_s17, %s5788_s17   ;;  %s3954_s16 = sphi %s4004_s16, %s5787_s16   ;;  %s3950_s15 = sphi %s4002_s15, %s5786_s15   ;;  %s3946_s14 = sphi %s4000_s14, %s5785_s14   ;;  %s3942_s13 = sphi %s3998_s13, %s5784_s13   ;;  %s3938_s12 = sphi %s3996_s12, %s5783_s12  }
   0x6   : > { %s25_s22 = sadd.s32 1, %s3958_s17  ;;  %s28_s23 = sadd.s32 1, %s3962_s18 }
   0x7   : > { %p26_p0 = scmp.ge.s32.totalorder %s25_s22, 2  ;;  %p115_p1 = scmp.ne.s32.totalorder %s3946_s14, %s3942_s13 }
   0x8   : > { %p116_p2 = scmp.eq.s32.totalorder %s2734_s20, 3  ;;  %p121_p5 = scmp.ne.s32.totalorder %s3942_s13, %s3938_s12 }
   0x9   : > { %s5791_s22 = smov (%p26_p0, %s25_s22), 0  ;;  %s5793_s23 = smov (!%p26_p0, %s28_s23), %s3962_s18 }
   0xa   : > { %s101_s24 = ssub.s32 %s3958_s17, %s5791_s22  ;;  %p4047_p3 = por %p116_p2, %p115_p1 }
   0xb   : > { %p30_p4 = scmp.ge.s32.totalorder %s5793_s23, 2  ;;  %p122_p6 = scmp.eq.s32.totalorder %s2735_s21, 3 }
   0xc   : > { %p2738_p7 = scmp.ge.s32.totalorder %s3966_s19, 1  ;;  %p154_p9 = scmp.lt.s32.totalorder %s3966_s19, 5 }
   0xd   : > { %s5795_s23 = smov (%p30_p4, %s5793_s23), 0  ;;  %p4056_p8 = por %p122_p6, %p121_p5 }
   0xe   : > { %s100_s27 = ssub.s32 %s3962_s18, %s5795_s23  ;;  %s105_s28 = sadd.s32 1, %s3946_s14 }
   0xf   : > { %s102_s29 = sor.u32 %s101_s24, %s100_s27  ;;  %p155_p10 = pnand %p2738_p7, %p154_p9 }
  0x10   : > { %p103_p11 = scmp.eq.s32.totalorder %s102_s29, 0 }
  0x11   : > { %158 = sbr.rel (%p155_p10) target bundleno = 802 (0x322), region = 32 }
  0x12   : > { %s4065_s30 = scalar_select %p103_p11, %s3946_s14, %s105_s28  }
  0x16   : > { %p178_p12 = scmp.lt.s32.totalorder %s3954_s16, 1  ;;  %s2743_s5 = smul.u32 160, %s3950_s15  ;;  %vm501_vm0 = vcmask 1040384   ;;  %vm590_vm1 = vcmask 1041408   ;;  %vm1527_vm2 = vcmask 130048   ;;  %vm1576_vm3 = vcmask 261120  }
  0x17   : > { %s3968_s11 = smov 16   ;;  %s3969_s20 = smov 32   ;;  %vm1609_vm4 = vcmask 392192   ;;  %vm1642_vm5 = vcmask 523264   ;;  %vm1675_vm6 = vcmask 654336   ;;  %vm1708_vm7 = vcmask 785408  }
  0x18   : > { %s179_s4 = scalar_select %p178_p12, %s3954_s16, 1  ;;  %vm2182_vm8 = vcmask 1044480   ;;  %vm1741_vm9 = vcmask 916480  }
  0x19   : > { %s3970_s21 = smov 48   ;;  %s3971_s24 = smov 64  }
  0x1a   : > { %s3775_s6 = smul.u32 800, %s179_s4  ;;  %s3972_s27 = smov 80  }
  0x1b   : > { %s3973_s28 = smov 96   ;;  %s3974_s29 = smov 112  }
  0x1c   : > { %s182_s9 = scalar_lea.vmem %s5655_s0, %s3775_s6 }
  0x1d   : > { %s4073_s10 = scalar_lea.vmem %s182_s9, %s2743_s5 }
  0x1e   : > { %v4076_v0 = vld [vmem:[%s4073_s10 + $0xb8] sm:$0xff]   ;;  %v4079_v1 = vld [vmem:[%s4073_s10 + $0x90] sm:$0xff]   ;;  %v4090_v6 = vld [vmem:[%s4073_s10 + $0xa0] sm:$0xff]  }
  0x1f   : > { %v4082_v2 = vld [vmem:[%s4073_s10 + $0x98] sm:$0xff]   ;;  %v511_v3 = vrot.slane %v4076_v0, 7  ;;  %v505_v5 = vrot.slane %v4079_v1, 7  ;;  %v4093_v7 = vld [vmem:[%s4073_s10 + $0xa8] sm:$0xff]   ;;  %v3040_v9 = vunpack.c.h.b16 %v4090_v6  ;;  %v4104_v12 = vld [vmem:[%s4073_s10 + $0x80] sm:$0xff]  }
  0x20   : > { %v4086_v4 = vunpack.c.l.b16 %v4082_v2  ;;  %v4096_v8 = vld [vmem:[%s4073_s10 + $0x78] sm:$0xff]   ;;  %v4100_v10 = vunpack.c.l.b16 %v4093_v7  ;;  %v3467_v13 = vld [vmem:[%s4073_s10 + $0xc8] sm:$0xff]   ;;  %v4108_v14 = vld [vmem:[%s4073_s10 + $0xd0] sm:$0xff]   ;;  %v4115_v16 = vunpack.c.l.b16 %v4104_v12  ;;  %v3024_v25 = vunpack.c.h.b16 %v4104_v12 }
  0x21   : > { %v3020_v11 = vunpack.c.h.b16 %v4096_v8  ;;  %538 = vrot.lane.b32.xlu0 %v511_v3, %s3968_s11  ;;  %530 = vrot.lane.b32.xlu1 %v505_v5, %s3968_s11  ;;  %v4118_v17 = vld [vmem:[%s4073_s10 + $0xc0] sm:$0xff]   ;;  %v3060_v19 = vunpack.c.h.b16 %v3467_v13  ;;  %v4123_v22 = vunpack.c.l.b16 %v4108_v14  ;;  %v3044_v31 = vunpack.c.h.b16 %v4093_v7  ;;  %v4139_v37 = vld [vmem:[%s4073_s10 + $0xe8] sm:$0xff]  }
  0x22   : > { %v488_v15 = vpack.c.b16 %v4086_v4, %v4086_v4  ;;  %v489_v18 = vpack.c.b16 %v4100_v10, %v3040_v9  ;;  %v4126_v23 = vunpack.c.l.b16 %v4118_v17  ;;  %v486_v30 = vpack.c.b16 %v3024_v25, %v3024_v25  ;;  %v4148_v43 = vld [vmem:[%s4073_s10 + $0xf0] sm:$0xff]   ;;  %v4151_v44 = vld [vmem:[%s4073_s10 + $0xf8] sm:$0xff]   ;;  %v4156_v45 = vld [vmem:[%s4073_s10 + $0xe0] sm:$0xff]  }
  0x23   : > { %v485_v21 = vpack.c.b16 %v4115_v16, %v3020_v11  ;;  %5691 = vst [vmem:[#allocation5_spill] sm:$0xff] %v4123_v22  ;;  %v493_v28 = vpack.c.b16 %v4123_v22, %v3060_v19  ;;  %v3064_v35 = vunpack.c.h.b16 %v4108_v14  ;;  %v490_v36 = vpack.c.b16 %v3044_v31, %v3044_v31  ;;  %v4175_v57 = vld [vmem:[%s4073_s10 + $0x110] sm:$0xff]   ;;  %v3459_v62 = vld [vmem:[%s4073_s10 + $0x88] sm:$0xf]  }
  0x24   : > { %v506_v20 = vrot.slane %v488_v15, 7  ;;  %v508_v24 = vrot.slane %v489_v18, 7  ;;  %v492_v29 = vpack.c.b16 %v4126_v23, %v4126_v23  ;;  %v503_v34 = vrot.slane %v486_v30, 7 }
  0x25   : > { %v502_v26 = vrot.slane %v485_v21, 7  ;;  %v514_v32 = vrot.slane %v493_v28, 7  ;;  %v494_v40 = vpack.c.b16 %v3064_v35, %v3064_v35  ;;  %v509_v41 = vrot.slane %v490_v36, 7 }
  0x26   : > { %534 = vrot.lane.b32.xlu2 %v508_v24, %s3968_s11  ;;  %v507_v27 = vsel %vm501_vm0, %v505_v5, %v506_v20  ;;  %v512_v33 = vrot.slane %v492_v29, 7  ;;  %v4145_v42 = vunpack.c.l.b16 %v4139_v37  ;;  %v3080_v47 = vunpack.c.h.b16 %v4148_v43  ;;  %v3475_v5 = vld [vmem:[%s4073_s10 + $0x108] sm:$0xff]  }
  0x27   : > { %v504_v39 = vsel %vm501_vm0, %v502_v26, %v503_v34  ;;  %v515_v46 = vrot.slane %v494_v40, 7  ;;  %v4160_v48 = vunpack.c.l.b16 %v4151_v44  ;;  %v4163_v49 = vunpack.c.h.b16 %v4151_v44 }
  0x28   : > { %v513_v38 = vsel %vm501_vm0, %v511_v3, %v512_v33  ;;  %v510_v50 = vsel %vm501_vm0, %v508_v24, %v509_v41  ;;  %v496_v51 = vpack.c.b16 %v4145_v42, %v4145_v42  ;;  %v517_v52 = vrot.slane %v4156_v45, 7 }
  0x29   : > { %532 = vrot.lane.b32.xlu1 %v507_v27, %s3968_s11  ;;  %526 = vrot.lane.b32.xlu0 %v502_v26, %s3968_s11  ;;  %v516_v53 = vsel %vm501_vm0, %v514_v32, %v515_v46  ;;  %v497_v54 = vpack.c.b16 %v4160_v48, %v3080_v47  ;;  %v498_v55 = vpack.c.b16 %v4163_v49, %v4163_v49  ;;  %v4182_v60 = vunpack.c.l.b16 %v4175_v57  ;;  %v3464_v26 = vld [vmem:[%s4073_s10 + $0xb0] sm:$0xf]  }
  0x2a   : > { %v518_v56 = vrot.slane %v496_v51, 7  ;;  %v3027_v9 = vunpack.c.l.b16 %v3459_v62  ;;  %v4199_v11 = vunpack.c.h.b16 %v4079_v1  ;;  %v4201_v13 = vrot.slane %v3475_v5, 7 }
  0x2b   : > { %v4179_v58 = vrot.slane %v497_v54, 7  ;;  %v521_v59 = vrot.slane %v498_v55, 7  ;;  %v500_v3 = vpack.c.b16 %v4182_v60, %v4182_v60  ;;  %v3036_v18 = vunpack.c.h.b16 %v4082_v2 }
  0x2c   : > { %v519_v61 = vsel %vm501_vm0, %v517_v52, %v518_v56  ;;  %5694 = vst [vmem:[#allocation8_spill] sm:$0xff] %v4201_v13  ;;  %v575_v19 = vpack.c.b16 %v3027_v9, %v3027_v9  ;;  %v591_v20 = vrot.slane %v4104_v12, 6  ;;  %v576_v21 = vpack.c.b16 %v4086_v4, %v4199_v11  ;;  %v4278_v9 = vld [vmem:[%s4073_s10 + $0x104] sm:$0xff]  }
  0x2d   : > { %5692 = vst [vmem:[#allocation6_spill] sm:$0xff] %v4179_v58  ;;  %v4189_v63 = vsel %vm501_vm0, %v4179_v58, %v521_v59  ;;  %v524_v15 = vrot.slane %v500_v3, 7  ;;  %v577_v1 = vpack.c.b16 %v3036_v18, %v3036_v18  ;;  %v3047_v12 = vunpack.c.l.b16 %v3464_v26  ;;  %v4287_v18 = vld [vmem:[%s4073_s10 + $0x120] sm:$0xff]  }
  0x2e   : > { %542 = vrot.lane.b32.xlu2 %v514_v32, %s3968_s11  ;;  %5693 = vst [vmem:[#allocation7_spill] sm:$0xff] %v4189_v63  ;;  %v592_v25 = vrot.slane %v575_v19, 6  ;;  %v594_v2 = vrot.slane %v576_v21, 6  ;;  %v4219_v28 = vunpack.c.h.b16 %v4076_v0  ;;  %v3056_v31 = vunpack.c.h.b16 %v4118_v17  ;;  %v3469_v32 = vld [vmem:[%s4073_s10 + $0xd8] sm:$0xf]  }
  0x2f   : > { %v4211_v24 = vsel %vm501_vm0, %v4201_v13, %v524_v15  ;;  %v595_v4 = vrot.slane %v577_v1, 6  ;;  %v579_v30 = vpack.c.b16 %v3047_v12, %v3047_v12  ;;  %v597_v34 = vrot.slane %v4093_v7, 6  ;;  %5696 = vst [vmem:[#allocation10_spill] sm:$0xff] %v4278_v9  ;;  %v4299_v21 = vld [vmem:[%s4073_s10 + $0x118] sm:$0xff]   ;;  %v3485_v1 = vld [vmem:[%s4073_s10 + $0x130] sm:$0xff]  }
  0x30   : > { %5695 = vst [vmem:[#allocation9_spill] sm:$0xff] %v4211_v24  ;;  %v593_v27 = vsel %vm590_vm1, %v591_v20, %v592_v25  ;;  %v580_v33 = vpack.c.b16 %v4126_v23, %v4219_v28  ;;  %v3067_v35 = vunpack.c.l.b16 %v3469_v32  ;;  %v581_v36 = vpack.c.b16 %v3056_v31, %v3056_v31 }
  0x31   : > { %540 = vrot.lane.b32.xlu1 %v513_v38, %s3968_s11  ;;  %528 = vrot.lane.b32.xlu0 %v504_v39, %s3968_s11  ;;  %v596_v29 = vsel %vm590_vm1, %v594_v2, %v595_v4  ;;  %v598_v0 = vrot.slane %v579_v30, 6  ;;  %v4235_v41 = vunpack.c.h.b16 %v4156_v45  ;;  %v603_v7 = vrot.slane %v4108_v14, 6  ;;  %5697 = vst [vmem:[#allocation11_spill] sm:$0xff] %v4299_v21  ;;  %v4311_v4 = vld [vmem:[%s4073_s10 + $0x148] sm:$0xff]   ;;  %v4319_v30 = vld [vmem:[%s4073_s10 + $0x158] sm:$0xff]  }
  0x32   : > { %v600_v38 = vrot.slane %v580_v33, 6  ;;  %v583_v17 = vpack.c.b16 %v3067_v35, %v3067_v35  ;;  %v601_v40 = vrot.slane %v581_v36, 6  ;;  %v3076_v46 = vunpack.c.h.b16 %v4139_v37  ;;  %v4333_v35 = vld [vmem:[%s4073_s10 + $0x170] sm:$0xff]  }
  0x33   : > { %v599_v39 = vsel %vm590_vm1, %v597_v34, %v598_v0  ;;  %v3092_v14 = vunpack.c.h.b16 %v3475_v5  ;;  %v3096_v55 = vunpack.c.h.b16 %v4175_v57  ;;  %v4253_v59 = vrot.slane %v4151_v44, 6  ;;  %v3748_v0 = vld [vmem:[%s4073_s10 + $0x154] sm:$0xff]  }
  0x34   : > { %v604_v23 = vrot.slane %v583_v17, 6  ;;  %v602_v47 = vsel %vm590_vm1, %v600_v38, %v601_v40  ;;  %v4282_v15 = vpack.c.b16 %v4160_v48, %v4160_v48  ;;  %v3123_v19 = vunpack.c.l.b16 %v4287_v18  ;;  %v4345_v40 = vld [vmem:[%s4073_s10 + $0x168] sm:$0xff]  }
  0x35   : > { %v589_v62 = vpack.c.b16 %v3096_v55, %v3096_v55  ;;  %v4294_v48 = vpack.c.b16 %v3092_v14, %v3092_v14  ;;  %v4307_v26 = vunpack.c.h.b16 %v3485_v1  ;;  %v4326_v32 = vunpack.c.h.b16 %v4319_v30 }
  0x36   : > { %536 = vrot.lane.b32.xlu2 %v510_v50, %s3968_s11  ;;  %v3474_v50 = vld [vmem:[%s4073_s10 + $0x100] sm:$0xf]   ;;  %v605_v51 = vsel %vm590_vm1, %v603_v7, %v604_v23 }
  0x37   : > { %v4245_v54 = vunpack.c.l.b16 %v3474_v50  ;;  %v613_v5 = vrot.slane %v589_v62, 6  ;;  %v702_v12 = vpack.c.b16 %v4307_v26, %v4307_v26  ;;  %v3750_v23 = vld [vmem:[%s4073_s10 + $0x17c] sm:$0xff]  }
  0x39   : > { %546 = vrot.lane.b32.xlu1 %v517_v52, %s3968_s11  ;;  %544 = vrot.lane.b32.xlu0 %v516_v53, %s3968_s11  ;;  %v584_v52 = vpack.c.b16 %v4145_v42, %v4235_v41  ;;  %v585_v53 = vpack.c.b16 %v3076_v46, %v3076_v46  ;;  %v587_v56 = vpack.c.b16 %v4245_v54, %v4245_v54 }
  0x3b   : > { %v606_v45 = vrot.slane %v584_v52, 6  ;;  %v607_v37 = vrot.slane %v585_v53, 6  ;;  %v610_v3 = vrot.slane %v587_v56, 6 }
  0x3d   : > { %v608_v42 = vsel %vm590_vm1, %v606_v45, %v607_v37  ;;  %v4265_v44 = vsel %vm590_vm1, %v4253_v59, %v610_v3  ;;  %v4378_v37 = vld [vmem:[%s4073_s10 + $0x138] sm:$0xff]  }
  0x3e   : > { %548 = vrot.lane.b32.xlu2 %v519_v61, %s3968_s11  ;;  %v588_v61 = vpack.c.b16 %v4182_v60, %v3092_v14  ;;  %v3120_v14 = vunpack.c.h.b16 %v4299_v21  ;;  %v3136_v22 = vunpack.c.h.b16 %v4378_v37 }
  0x40   : > { %v4261_v57 = vrot.slane %v588_v61, 6  ;;  %v763_v56 = vpack.c.b16 %v3123_v19, %v3120_v14 }
  0x41   : > { %552 = vrot.lane.b32.xlu1 %v4189_v63, %s3968_s11  ;;  %550 = vrot.lane.b32.xlu0 %v4179_v58, %s3968_s11 }
  0x42   : > { %v4271_v60 = vsel %vm590_vm1, %v4261_v57, %v613_v5  ;;  %v4395_v5 = vrot.slane %v763_v56, 7 }
  0x44   : > { %5701 = vst [vmem:[#allocation15_spill] sm:$0xff] %v4395_v5 }
  0x46   : > { %554 = vrot.lane.b32.xlu2 %v4201_v13, %s3968_s11 }
  0x49   : > { %615 = vrot.lane.b32.xlu1 %v591_v20, %s3969_s20  ;;  %556 = vrot.lane.b32.xlu0 %v4211_v24, %s3968_s11  ;;  %v700_v20 = vpack.c.b16 %v3123_v19, %v3123_v19 }
  0x4e   : > { %617 = vrot.lane.b32.xlu2 %v593_v27, %s3969_s20  ;;  %v3487_v27 = vld [vmem:[%s4073_s10 + $0x140] sm:$0xff]  }
  0x51   : > { %621 = vrot.lane.b32.xlu1 %v596_v29, %s3969_s20  ;;  %619 = vrot.lane.b32.xlu0 %v594_v2, %s3969_s20  ;;  %v3746_v2 = vld [vmem:[%s4073_s10 + $0x12c] sm:$0xff]   ;;  %v3143_v29 = vunpack.c.l.b16 %v4311_v4 }
  0x53   : > { %v704_v33 = vpack.c.b16 %v3143_v29, %v3143_v29 }
  0x56   : > { %623 = vrot.lane.b32.xlu2 %v597_v34, %s3969_s20  ;;  %v706_v34 = vpack.c.b16 %v4326_v32, %v4326_v32 }
  0x59   : > { %627 = vrot.lane.b32.xlu1 %v600_v38, %s3969_s20  ;;  %625 = vrot.lane.b32.xlu0 %v599_v39, %s3969_s20  ;;  %v3163_v38 = vunpack.c.l.b16 %v4333_v35 }
  0x5b   : > { %v4351_v46 = vpack.c.b16 %v3163_v38, %v3163_v38 }
  0x5e   : > { %629 = vrot.lane.b32.xlu2 %v602_v47, %s3969_s20 }
  0x61   : > { %633 = vrot.lane.b32.xlu1 %v605_v51, %s3969_s20  ;;  %631 = vrot.lane.b32.xlu0 %v603_v7, %s3969_s20  ;;  %v4348_v7 = vld [vmem:[%s4073_s10 + $0x180] sm:$0xff]  }
  0x62   : > { %v4356_v47 = vunpack.c.h.b16 %v4348_v7 }
  0x64   : > { %v4365_v51 = vpack.c.b16 %v4356_v47, %v4356_v47 }
  0x66   : > { %635 = vrot.lane.b32.xlu2 %v606_v45, %s3969_s20  ;;  %v4375_v45 = vunpack.c.h.b16 %v4287_v18 }
  0x68   : > { %5700 = vst [vmem:[#allocation14_spill] sm:$0xff] %v4375_v45  ;;  %v764_v3 = vpack.c.b16 %v4375_v45, %v4375_v45 }
  0x69   : > { %639 = vrot.lane.b32.xlu1 %v4253_v59, %s3969_s20  ;;  %637 = vrot.lane.b32.xlu0 %v608_v42, %s3969_s20  ;;  %v4387_v42 = vunpack.c.l.b16 %v4378_v37 }
  0x6a   : > { %v782_v19 = vrot.slane %v764_v3, 7  ;;  %v4421_v3 = vld [vmem:[%s4073_s10 + $0x160] sm:$0xff]  }
  0x6b   : > { %v4432_v45 = vunpack.c.l.b16 %v4421_v3 }
  0x6c   : > { %v4418_v56 = vsel %vm501_vm0, %v4395_v5, %v782_v19  ;;  %v3160_v19 = vunpack.c.h.b16 %v4345_v40 }
  0x6d   : > { %5705 = vst [vmem:[#allocation19_spill] sm:$0xff] %v4418_v56 }
  0x6e   : > { %641 = vrot.lane.b32.xlu2 %v4265_v44, %s3969_s20 }
  0x71   : > { %645 = vrot.lane.b32.xlu1 %v4271_v60, %s3969_s20  ;;  %643 = vrot.lane.b32.xlu0 %v4261_v57, %s3969_s20 }
  0x76   : > { %711 = vrot.lane.b32.xlu2 %v4148_v43, %s3970_s21 }
  0x79   : > { %715 = vrot.lane.b32.xlu1 %v4278_v9, %s3970_s21  ;;  %713 = vrot.lane.b32.xlu0 %v4282_v15, %s3970_s21  ;;  %v3484_v9 = vld [vmem:[%s4073_s10 + $0x128] sm:$0xf]  }
  0x7e   : > { %717 = vrot.lane.b32.xlu2 %v4294_v48, %s3970_s21 }
  0x80   : > { %v4302_v25 = vpop.permute.xlu2 %534 }
  0x81   : > { %721 = vrot.lane.b32.xlu1 %v700_v20, %s3970_s21  ;;  %719 = vrot.lane.b32.xlu0 %v4299_v21, %s3970_s21  ;;  %v766_v20 = vpack.c.b16 %v4387_v42, %v4387_v42 }
  0x86   : > { %723 = vrot.lane.b32.xlu2 %v3746_v2, %s3970_s21 }
  0x88   : > { %v4321_v31 = vpop.permute.xlu2 %542 }
  0x89   : > { %5698 = vst [vmem:[#allocation12_spill] sm:$0xff] %v4321_v31  ;;  %727 = vrot.lane.b32.xlu1 %v3487_v27, %s3970_s21  ;;  %725 = vrot.lane.b32.xlu0 %v702_v12, %s3970_s21  ;;  %v3140_v12 = vunpack.c.h.b16 %v3487_v27 }
  0x8b   : > { %v767_v27 = vpack.c.b16 %v3143_v29, %v3140_v12  ;;  %v4444_v12 = vunpack.c.h.b16 %v4333_v35 }
  0x8d   : > { %5708 = vst [vmem:[#allocation22_spill] sm:$0xff] %v4444_v12 }
  0x8e   : > { %729 = vrot.lane.b32.xlu2 %v704_v33, %s3970_s21  ;;  %v4407_v33 = vrot.slane %v3485_v1, 7 }
  0x90   : > { %v4335_v36 = vpop.permute.xlu2 %536  ;;  %5702 = vst [vmem:[#allocation16_spill] sm:$0xff] %v4407_v33 }
  0x91   : > { %733 = vrot.lane.b32.xlu1 %v706_v34, %s3970_s21  ;;  %731 = vrot.lane.b32.xlu0 %v3748_v0, %s3970_s21  ;;  %v785_v34 = vrot.slane %v766_v20, 7  ;;  %v4410_v0 = vunpack.c.h.b16 %v4311_v4 }
  0x93   : > { %v4340_v39 = vpop.permute.xlu0 %538  ;;  %v4342_v17 = vpop.permute.xlu1 %530  ;;  %5703 = vst [vmem:[#allocation17_spill] sm:$0xff] %v4410_v0  ;;  %v4427_v1 = vsel %vm501_vm0, %v4407_v33, %v785_v34  ;;  %v768_v20 = vpack.c.b16 %v4410_v0, %v4410_v0  ;;  %v4441_v34 = vrot.slane %v767_v27, 7 }
  0x94   : > { %5699 = vst [vmem:[#allocation13_spill] sm:$0xff] %v4340_v39  ;;  %v3489_v39 = vld [vmem:[%s4073_s10 + $0x150] sm:$0xf]  }
  0x95   : > { %5706 = vst [vmem:[#allocation20_spill] sm:$0xff] %v4427_v1  ;;  %v788_v29 = vrot.slane %v768_v20, 7  ;;  %v772_v20 = vpack.c.b16 %v4444_v12, %v4444_v12 }
  0x96   : > { %735 = vrot.lane.b32.xlu2 %v4345_v40, %s3970_s21  ;;  %5707 = vst [vmem:[#allocation21_spill] sm:$0xff] %v4441_v34 }
  0x97   : > { %v4459_v27 = vsel %vm501_vm0, %v4441_v34, %v788_v29 }
  0x98   : > { %v4358_v50 = vpop.permute.xlu2 %548  ;;  %5711 = vst [vmem:[#allocation25_spill] sm:$0xff] %v4459_v27 }
  0x99   : > { %739 = vrot.lane.b32.xlu1 %v3750_v23, %s3970_s21  ;;  %737 = vrot.lane.b32.xlu0 %v4351_v46, %s3970_s21 }
  0x9b   : > { %v4367_v52 = vpop.permute.xlu1 %532  ;;  %v4369_v53 = vpop.permute.xlu0 %526 }
  0x9e   : > { %741 = vrot.lane.b32.xlu2 %v4365_v51, %s3970_s21 }
  0xa0   : > { %v4380_v55 = vpop.permute.xlu2 %554 }
  0xa1   : > { %801 = vrot.lane.b32.xlu1 %v4189_v63, %s3971_s24  ;;  %799 = vrot.lane.b32.xlu0 %v4179_v58, %s3971_s24  ;;  %v854_v63 = vpack.c.b16 %v3136_v22, %v3136_v22  ;;  %v3156_v22 = vunpack.c.h.b16 %v4421_v3 }
  0xa3   : > { %v4389_v61 = vpop.permute.xlu1 %540  ;;  %v4391_v62 = vpop.permute.xlu0 %528 }
  0xa6   : > { %803 = vrot.lane.b32.xlu2 %v4201_v13, %s3971_s24  ;;  %v4464_v13 = vld [vmem:[%s4073_s10 + $0x188] sm:$0xff]  }
  0xa8   : > { %v4401_v2 = vpop.permute.xlu2 %617 }
  0xa9   : > { %807 = vrot.lane.b32.xlu1 %v4395_v5, %s3971_s24  ;;  %805 = vrot.lane.b32.xlu0 %v4211_v24, %s3971_s24  ;;  %v771_v24 = vpack.c.b16 %v3163_v38, %v3160_v19  ;;  %v794_v38 = vrot.slane %v772_v20, 7  ;;  %v4475_v19 = vunpack.c.l.b16 %v4464_v13 }
  0xab   : > { %v4412_v23 = vpop.permute.xlu1 %546  ;;  %v4414_v14 = vpop.permute.xlu0 %544  ;;  %v774_v20 = vpack.c.b16 %v4475_v19, %v4475_v19 }
  0xac   : > { %5704 = vst [vmem:[#allocation18_spill] sm:$0xff] %v4414_v14 }
  0xae   : > { %809 = vrot.lane.b32.xlu2 %v4418_v56, %s3971_s24  ;;  %v770_v56 = vpack.c.b16 %v4432_v45, %v4432_v45 }
  0xb0   : > { %v4434_v21 = vpop.permute.xlu2 %623 }
  0xb1   : > { %813 = vrot.lane.b32.xlu1 %v4427_v1, %s3971_s24  ;;  %811 = vrot.lane.b32.xlu0 %v4407_v33, %s3971_s24  ;;  %v4453_v1 = vrot.slane %v4319_v30, 7  ;;  %v791_v33 = vrot.slane %v770_v56, 7  ;;  %v4472_v30 = vrot.slane %v771_v24, 7 }
  0xb3   : > { %v4446_v0 = vpop.permute.xlu1 %552  ;;  %v4448_v5 = vpop.permute.xlu0 %550  ;;  %5710 = vst [vmem:[#allocation24_spill] sm:$0xff] %v4453_v1  ;;  %v4489_v24 = vsel %vm501_vm0, %v4472_v30, %v794_v38 }
  0xb4   : > { %5709 = vst [vmem:[#allocation23_spill] sm:$0xff] %v4448_v5 }
  0xb6   : > { %815 = vrot.lane.b32.xlu2 %v4441_v34, %s3971_s24  ;;  %v4483_v34 = vsel %vm501_vm0, %v4453_v1, %v791_v33  ;;  %v4500_v33 = vrot.slane %v4348_v7, 7  ;;  %v4519_v7 = vunpack.c.l.b16 %v3484_v9  ;;  %v869_v9 = vrot.slane %v4287_v18, 6 }
  0xb7   : > { %5712 = vst [vmem:[#allocation26_spill] sm:$0xff] %v4483_v34  ;;  %v875_v18 = vrot.slane %v4311_v4, 6 }
  0xb8   : > { %v4466_v5 = vpop.permute.xlu2 %629  ;;  %5714 = vst [vmem:[#allocation28_spill] sm:$0xff] %v4519_v7 }
  0xb9   : > { %819 = vrot.lane.b32.xlu1 %v4453_v1, %s3971_s24  ;;  %817 = vrot.lane.b32.xlu0 %v4459_v27, %s3971_s24  ;;  %v797_v1 = vrot.slane %v774_v20, 7 }
  0xbb   : > { %v4477_v29 = vpop.permute.xlu1 %615  ;;  %v4479_v56 = vpop.permute.xlu0 %556  ;;  %v4510_v12 = vsel %vm501_vm0, %v4500_v33, %v797_v1  ;;  %v852_v1 = vpack.c.b16 %v4519_v7, %v4519_v7 }
  0xbe   : > { %821 = vrot.lane.b32.xlu2 %v4483_v34, %s3971_s24 }
  0xc0   : > { %v4493_v27 = vpop.permute.xlu2 %635 }
  0xc1   : > { %825 = vrot.lane.b32.xlu1 %v4489_v24, %s3971_s24  ;;  %823 = vrot.lane.b32.xlu0 %v4472_v30, %s3971_s24 }
  0xc3   : > { %v4502_v34 = vpop.permute.xlu1 %621  ;;  %v4504_v38 = vpop.permute.xlu0 %619 }
  0xc4   : > { %5713 = vst [vmem:[#allocation27_spill] sm:$0xff] %v4504_v38 }
  0xc6   : > { %827 = vrot.lane.b32.xlu2 %v4500_v33, %s3971_s24 }
  0xc8   : > { %v4513_v14 = vpop.permute.xlu2 %641 }
  0xc9   : > { %887 = vrot.lane.b32.xlu1 %v4253_v59, %s3972_s27  ;;  %829 = vrot.lane.b32.xlu0 %v4510_v12, %s3971_s24  ;;  %v853_v59 = vpack.c.b16 %v4387_v42, %v4307_v26  ;;  %v873_v26 = vrot.slane %v854_v63, 6 }
  0xcb   : > { %v4521_v20 = vpop.permute.xlu1 %627  ;;  %v4523_v31 = vpop.permute.xlu0 %625  ;;  %v872_v38 = vrot.slane %v853_v59, 6 }
  0xcc   : > { %5715 = vst [vmem:[#allocation29_spill] sm:$0xff] %v4521_v20  ;;  %v4540_v20 = vunpack.c.l.b16 %v3489_v39 }
  0xce   : > { %889 = vrot.lane.b32.xlu2 %v4265_v44, %s3972_s27  ;;  %v870_v44 = vrot.slane %v852_v1, 6  ;;  %5716 = vst [vmem:[#allocation30_spill] sm:$0xff] %v4540_v20 }
  0xd0   : > { %v4531_v58 = vpop.permute.xlu2 %711 }
  0xd1   : > { %893 = vrot.lane.b32.xlu1 %v4271_v60, %s3972_s27  ;;  %891 = vrot.lane.b32.xlu0 %v4261_v57, %s3972_s27  ;;  %v871_v60 = vsel %vm590_vm1, %v869_v9, %v870_v44  ;;  %v856_v57 = vpack.c.b16 %v4540_v20, %v4540_v20  ;;  %v3494_v44 = vld [vmem:[%s4073_s10 + $0x178] sm:$0xf]   ;;  %v857_v20 = vpack.c.b16 %v4432_v45, %v4326_v32  ;;  %v4580_v45 = vrot.slane %v4333_v35, 6 }
  0xd3   : > { %v4542_v7 = vpop.permute.xlu1 %633  ;;  %v4544_v37 = vpop.permute.xlu0 %631  ;;  %v876_v39 = vrot.slane %v856_v57, 6  ;;  %v878_v3 = vrot.slane %v857_v20, 6  ;;  %v3176_v57 = vunpack.c.h.b16 %v4464_v13  ;;  %5722 = vst [vmem:[#allocation36_spill] sm:$0xff] %v4580_v45  ;;  %v861_v20 = vpack.c.b16 %v4475_v19, %v4356_v47 }
  0xd4   : > { %5717 = vst [vmem:[#allocation31_spill] sm:$0xff] %v4542_v7 }
  0xd5   : > { %5718 = vst [vmem:[#allocation32_spill] sm:$0xff] %v4544_v37  ;;  %v877_v63 = vsel %vm590_vm1, %v875_v18, %v876_v39  ;;  %v4566_v37 = vunpack.c.l.b16 %v3494_v44  ;;  %v3507_v44 = vld [vmem:[%s4073_s10 + $0x1b8] sm:$0xff]   ;;  %v4593_v35 = vrot.slane %v861_v20, 6 }
  0xd6   : > { %895 = vrot.lane.b32.xlu2 %v869_v9, %s3972_s27  ;;  %v874_v9 = vsel %vm590_vm1, %v872_v38, %v873_v26 }
  0xd7   : > { %5720 = vst [vmem:[#allocation34_spill] sm:$0xff] %v4566_v37  ;;  %v860_v32 = vpack.c.b16 %v4566_v37, %v4566_v37  ;;  %v3220_v37 = vunpack.c.h.b16 %v3507_v44 }
  0xd8   : > { %v4550_v42 = vpop.permute.xlu2 %717  ;;  %5724 = vst [vmem:[#allocation38_spill] sm:$0xff] %v4593_v35 }
  0xd9   : > { %899 = vrot.lane.b32.xlu1 %v872_v38, %s3972_s27  ;;  %897 = vrot.lane.b32.xlu0 %v871_v60, %s3972_s27  ;;  %v858_v60 = vpack.c.b16 %v3156_v22, %v3156_v22  ;;  %v862_v22 = vpack.c.b16 %v3176_v57, %v3176_v57 }
  0xdb   : > { %v4556_v1 = vpop.permute.xlu1 %639  ;;  %v4558_v59 = vpop.permute.xlu0 %637  ;;  %v879_v38 = vrot.slane %v858_v60, 6  ;;  %v885_v60 = vrot.slane %v862_v22, 6  ;;  %v3752_v22 = vld [vmem:[%s4073_s10 + $0x17c] sm:$0xff]  }
  0xdc   : > { %5719 = vst [vmem:[#allocation33_spill] sm:$0xff] %v4556_v1 }
  0xde   : > { %901 = vrot.lane.b32.xlu2 %v874_v9, %s3972_s27  ;;  %v882_v9 = vrot.slane %v860_v32, 6  ;;  %v4609_v32 = vsel %vm590_vm1, %v4593_v35, %v885_v60 }
  0xdf   : > { %5727 = vst [vmem:[#allocation41_spill] sm:$0xff] %v4609_v32 }
  0xe0   : > { %v4568_v4 = vpop.permute.xlu2 %723  ;;  %v4601_v19 = vsel %vm590_vm1, %v4580_v45, %v882_v9  ;;  %v4623_v9 = vld [vmem:[%s4073_s10 + $0x198] sm:$0xff]  }
  0xe1   : > { %5721 = vst [vmem:[#allocation35_spill] sm:$0xff] %v4568_v4  ;;  %905 = vrot.lane.b32.xlu1 %v877_v63, %s3972_s27  ;;  %903 = vrot.lane.b32.xlu0 %v875_v18, %s3972_s27  ;;  %v880_v18 = vsel %vm590_vm1, %v878_v3, %v879_v38  ;;  %v3508_v63 = vld [vmem:[%s4073_s10 + $0x1c0] sm:$0xff]   ;;  %v4631_v60 = vunpack.c.l.b16 %v4623_v9 }
  0xe2   : > { %5725 = vst [vmem:[#allocation39_spill] sm:$0xff] %v4601_v19 }
  0xe3   : > { %v4573_v26 = vpop.permute.xlu1 %645  ;;  %v4575_v39 = vpop.permute.xlu0 %643  ;;  %5729 = vst [vmem:[#allocation43_spill] sm:$0xff] %v4623_v9  ;;  %v4652_v9 = vld [vmem:[%s4073_s10 + $0x1a8] sm:$0xff]  }
  0xe4   : > { %5730 = vst [vmem:[#allocation44_spill] sm:$0xff] %v4631_v60 }
  0xe5   : > { %5734 = vst [vmem:[#allocation48_spill] sm:$0xff] %v4652_v9 }
  0xe6   : > { %907 = vrot.lane.b32.xlu2 %v878_v3, %s3972_s27  ;;  %v3223_v3 = vunpack.c.l.b16 %v3508_v63 }
  0xe8   : > { %v4586_v13 = vpop.permute.xlu2 %729  ;;  %v4603_v57 = vpack.c.b16 %v3223_v3, %v3220_v37 }
  0xe9   : > { %5723 = vst [vmem:[#allocation37_spill] sm:$0xff] %v4586_v13  ;;  %911 = vrot.lane.b32.xlu1 %v4580_v45, %s3972_s27  ;;  %909 = vrot.lane.b32.xlu0 %v880_v18, %s3972_s27 }
  0xea   : > { %5726 = vst [vmem:[#allocation40_spill] sm:$0xff] %v4603_v57  ;;  %v3537_v57 = vld [vmem:[%s4073_s10 + $0x1e8] sm:$0xff]  }
  0xeb   : > { %v4595_v38 = vpop.permute.xlu1 %715  ;;  %v4597_v47 = vpop.permute.xlu0 %713  ;;  %v4670_v4 = vunpack.c.h.b16 %v3537_v57 }
  0xee   : > { %913 = vrot.lane.b32.xlu2 %v4601_v19, %s3972_s27 }
  0xf0   : > { %v4611_v18 = vpop.permute.xlu2 %735 }
  0xf1   : > { %5728 = vst [vmem:[#allocation42_spill] sm:$0xff] %v4611_v18  ;;  %917 = vrot.lane.b32.xlu1 %v4609_v32, %s3972_s27  ;;  %915 = vrot.lane.b32.xlu0 %v4593_v35, %s3972_s27  ;;  %v4635_v32 = vld [vmem:[%s4073_s10 + $0x1e0] sm:$0xff]   ;;  %v3243_v35 = vunpack.c.l.b16 %v3537_v57 }
  0xf3   : > { %v722_v20 = vpop.permute.xlu1 %721  ;;  %v4617_v37 = vpop.permute.xlu0 %719 }
  0xf6   : > { %983 = vrot.lane.b32.xlu2 %v4345_v40, %s3973_s28  ;;  %v3240_v40 = vunpack.c.h.b16 %v4635_v32 }
  0xf8   : > { %v4625_v63 = vpop.permute.xlu2 %741  ;;  %v4642_v18 = vpack.c.b16 %v3243_v35, %v3240_v40  ;;  %v4660_v40 = vunpack.c.h.b16 %v4652_v9 }
  0xf9   : > { %987 = vrot.lane.b32.xlu1 %v3752_v22, %s3973_s28  ;;  %985 = vrot.lane.b32.xlu0 %v4351_v46, %s3973_s28  ;;  %v972_v46 = vpack.c.b16 %v4631_v60, %v4631_v60  ;;  %v4649_v22 = vld [vmem:[%s4073_s10 + $0x190] sm:$0xff]   ;;  %v458_v60 = vpack.c.b16 %v4100_v10, %v4100_v10 }
  0xfa   : > { %5732 = vst [vmem:[#allocation46_spill] sm:$0xff] %v4642_v18  ;;  %v3754_v18 = vld [vmem:[%s4073_s10 + $0x1a4] sm:$0xff]   ;;  %v974_v7 = vpack.c.b16 %v4660_v40, %v4660_v40 }
  0xfb   : > { %v4638_v19 = vpop.permute.xlu1 %727  ;;  %v4640_v45 = vpop.permute.xlu0 %725  ;;  %5733 = vst [vmem:[#allocation47_spill] sm:$0xff] %v4649_v22  ;;  %v1545_v9 = vsel %vm1527_vm2, %v458_v60, %v4335_v36 }
  0xfc   : > { %5731 = vst [vmem:[#allocation45_spill] sm:$0xff] %v4638_v19  ;;  %v3538_v19 = vld [vmem:[%s4073_s10 + $0x1f0] sm:$0xf]   ;;  %v1588_v10 = vsel %vm1576_vm3, %v1545_v9, %v4523_v31 }
  0xfd   : > { %5736 = vst [vmem:[#allocation50_spill] sm:$0xff] %v4660_v40  ;;  %v3510_v40 = vld [vmem:[%s4073_s10 + $0x1d0] sm:$0xff]  }
  0xfe   : > { %989 = vrot.lane.b32.xlu2 %v4365_v51, %s3973_s28  ;;  %v3756_v9 = vld [vmem:[%s4073_s10 + $0x1cc] sm:$0xff]  }
 0x100   : > { %v4654_v1 = vpop.permute.xlu2 %803 }
 0x101   : > { %5735 = vst [vmem:[#allocation49_spill] sm:$0xff] %v4654_v1  ;;  %993 = vrot.lane.b32.xlu1 %v972_v46, %s3973_s28  ;;  %991 = vrot.lane.b32.xlu0 %v4649_v22, %s3973_s28  ;;  %v3347_v46 = vunpack.c.l.b16 %v3538_v19  ;;  %v1621_v22 = vsel %vm1609_vm4, %v1588_v10, %v722_v20  ;;  %v976_v19 = vpack.c.b16 %v3223_v3, %v3223_v3  ;;  %v4689_v20 = vunpack.c.h.b16 %v3510_v40 }
 0x102   : > { %v456_v40 = vpack.c.b16 %v4199_v11, %v4199_v11 }
 0x103   : > { %v734_v51 = vpop.permute.xlu1 %733  ;;  %v4666_v13 = vpop.permute.xlu0 %731  ;;  %v2038_v36 = vpack.c.b16 %v3347_v46, %v4670_v4  ;;  %v980_v46 = vpack.c.b16 %v3243_v35, %v3243_v35  ;;  %v3742_v35 = vld [vmem:[%s4073_s10 + $0x104] sm:$0xff]  }
 0x105   : > { %v2046_v31 = vrot.slane %v2038_v36, 6  ;;  %v4707_v36 = vld [vmem:[%s4073_s10 + $0x1f8] sm:$0xff]  }
 0x106   : > { %995 = vrot.lane.b32.xlu2 %v3754_v18, %s3973_s28 }
 0x108   : > { %v810_v1 = vpop.permute.xlu2 %809 }
 0x109   : > { %v4679_v57 = vsel %vm1642_vm5, %v1621_v22, %v810_v1  ;;  %999 = vrot.lane.b32.xlu1 %v3507_v44, %s3973_s28  ;;  %997 = vrot.lane.b32.xlu0 %v974_v7, %s3973_s28  ;;  %v464_v7 = vpack.c.b16 %v4235_v41, %v4235_v41  ;;  %v978_v44 = vpack.c.b16 %v4689_v20, %v4689_v20 }
 0x10b   : > { %v740_v60 = vpop.permute.xlu1 %739  ;;  %v4684_v18 = vpop.permute.xlu0 %737  ;;  %v1563_v10 = vsel %vm1527_vm2, %v464_v7, %v4358_v50  ;;  %v4721_v50 = vunpack.c.h.b16 %v4707_v36  ;;  %v4728_v7 = vld [vmem:[%s4073_s10 + $0x200] sm:$0xff]  }
 0x10c   : > { %v1600_v41 = vsel %vm1576_vm3, %v1563_v10, %v4558_v59  ;;  %v460_v10 = vpack.c.b16 %v4219_v28, %v4219_v28  ;;  %v454_v28 = vpack.c.b16 %v4115_v16, %v4115_v16 }
 0x10e   : > { %1001 = vrot.lane.b32.xlu2 %v976_v19, %s3973_s28  ;;  %v1633_v19 = vsel %vm1609_vm4, %v1600_v41, %v734_v51  ;;  %v3758_v51 = vld [vmem:[%s4073_s10 + $0x1f4] sm:$0xff]   ;;  %v2047_v41 = vrot.slane %v4728_v7, 6 }
 0x110   : > { %v4691_v1 = vpop.permute.xlu2 %815 }
 0x111   : > { %2054 = vrot.lane.b32.xlu1 %v2046_v31, %s3968_s11  ;;  %1003 = vrot.lane.b32.xlu0 %v3756_v9, %s3973_s28  ;;  %v1539_v9 = vsel %vm1527_vm2, %v456_v40, %v4367_v52 }
 0x112   : > { %v1584_v59 = vsel %vm1576_vm3, %v1539_v9, %v4502_v34  ;;  %v982_v34 = vpack.c.b16 %v4721_v50, %v4721_v50 }
 0x113   : > { %v802_v3 = vpop.permute.xlu1 %801  ;;  %v4699_v22 = vpop.permute.xlu0 %799  ;;  %v1617_v52 = vsel %vm1609_vm4, %v1584_v59, %v4550_v42  ;;  %v1551_v59 = vsel %vm1527_vm2, %v460_v10, %v4389_v61 }
 0x116   : > { %1005 = vrot.lane.b32.xlu2 %v978_v44, %s3973_s28 }
 0x118   : > { %v822_v31 = vpop.permute.xlu2 %821 }
 0x119   : > { %v4715_v11 = vsel %vm1642_vm5, %v1633_v19, %v822_v31  ;;  %1009 = vrot.lane.b32.xlu1 %v980_v46, %s3973_s28  ;;  %1007 = vrot.lane.b32.xlu0 %v4635_v32, %s3973_s28  ;;  %v1572_v19 = vsel %vm1527_vm2, %v3742_v35, %v4380_v55  ;;  %v1592_v55 = vsel %vm1576_vm3, %v1551_v59, %v4466_v5  ;;  %v3518_v59 = vld [vmem:[%s4073_s10 + $0x10] sm:$0xf]  }
 0x11a   : > { %v1606_v42 = vsel %vm1576_vm3, %v1572_v19, %v4575_v39  ;;  %v3542_v39 = vld [vmem:[%s4073_s10 + $0x210] sm:$0xff]   ;;  %v1625_v35 = vsel %vm1609_vm4, %v1592_v55, %v4640_v45 }
 0x11b   : > { %v808_v44 = vpop.permute.xlu1 %807  ;;  %v806_v40 = vpop.permute.xlu0 %805  ;;  %v1639_v31 = vsel %vm1609_vm4, %v1606_v42, %v740_v60  ;;  %v3543_v60 = vld [vmem:[%s4073_s10 + $0x218] sm:$0xf]   ;;  %v4766_v10 = vunpack.c.h.b16 %v3542_v39 }
 0x11c   : > { %v4733_v46 = vsel %vm1642_vm5, %v1617_v52, %v806_v40  ;;  %v1533_v40 = vsel %vm1527_vm2, %v454_v28, %v4391_v62 }
 0x11d   : > { %v1580_v5 = vsel %vm1576_vm3, %v1533_v40, %v4401_v2 }
 0x11e   : > { %1011 = vrot.lane.b32.xlu2 %v3758_v51, %s3973_s28  ;;  %v1613_v45 = vsel %vm1609_vm4, %v1580_v5, %v4597_v47 }
 0x11f   : > { %v1646_v19 = vsel %vm1642_vm5, %v1613_v45, %v802_v3  ;;  %v1542_v3 = vsel %vm1527_vm2, %v4090_v6, %v4302_v25  ;;  %v1569_v6 = vsel %vm1527_vm2, %v4282_v15, %v4446_v0 }
 0x120   : > { %v828_v9 = vpop.permute.xlu2 %827 }
 0x121   : > { %v4751_v52 = vsel %vm1642_vm5, %v1639_v31, %v828_v9  ;;  %2056 = vrot.lane.b32.xlu1 %v2047_v41, %s3968_s11  ;;  %1013 = vrot.lane.b32.xlu0 %v982_v34, %s3973_s28  ;;  %v3367_v41 = vunpack.c.l.b16 %v3543_v60  ;;  %v3517_v34 = vld [vmem:[%s4073_s10 + $0x8] sm:$0xff]   ;;  %v3258_v31 = vld [vmem:[%s4073_s10] sm:$0xff]   ;;  %v3267_v60 = vunpack.c.l.b16 %v3518_v59 }
 0x122   : > { %v3264_v9 = vunpack.c.h.b16 %v3517_v34  ;;  %v1199_v55 = vrot.slane %v3258_v31, 5  ;;  %v1604_v34 = vsel %vm1576_vm3, %v1569_v6, %v4513_v14  ;;  %v1530_v14 = vsel %vm1527_vm2, %v4096_v8, %v4369_v53  ;;  %v3740_v59 = vld [vmem:[%s4073_s10 + $0xdc] sm:$0xff]   ;;  %v5738_v6 = vld [vmem:[#allocation7_spill] sm:$0xff] }
 0x123   : > { %v814_v61 = vpop.permute.xlu1 %813  ;;  %v4761_v51 = vpop.permute.xlu0 %811  ;;  %v2040_v2 = vpack.c.b16 %v3367_v41, %v4766_v10 }
 0x124   : > { %v1658_v16 = vsel %vm1642_vm5, %v1625_v35, %v814_v61  ;;  %v1586_v35 = vsel %vm1576_vm3, %v1542_v3, %v4434_v21  ;;  %v3604_v61 = vld [vmem:[%s4073_s10 + $0x4] sm:$0xff]   ;;  %v1256_v40 = vpack.c.b16 %v3264_v9, %v3264_v9  ;;  %v1343_v21 = vpack.c.b16 %v3267_v60, %v3264_v9  ;;  %v3736_v60 = vld [vmem:[%s4073_s10 + $0x8c] sm:$0xff]  }
 0x125   : > { %v2048_v39 = vrot.slane %v2040_v2, 6  ;;  %v1619_v41 = vsel %vm1609_vm4, %v1586_v35, %v4617_v37  ;;  %v1271_v37 = vrot.slane %v3604_v61, 7  ;;  %v1575_v3 = vsel %vm1527_vm2, %v4294_v48, %v4479_v56 }
 0x126   : > { %1071 = vrot.lane.b32.xlu2 %v4472_v30, %s3974_s29  ;;  %v1652_v5 = vsel %vm1642_vm5, %v1619_v41, %v808_v44  ;;  %v1637_v44 = vsel %vm1609_vm4, %v1604_v34, %v4684_v18  ;;  %v1351_v0 = vrot.slane %v1343_v21, 5  ;;  %v1578_v18 = vsel %vm1576_vm3, %v1530_v14, %v4477_v29  ;;  %v5740_v21 = vld [vmem:[#allocation49_spill] sm:$0xff]  ;;  %v3760_v14 = vld [vmem:[%s4073_s10 + $0x14] sm:$0xff]  }
 0x127   : > { %v1611_v8 = vsel %vm1609_vm4, %v1578_v18, %v4531_v58  ;;  %v1608_v53 = vsel %vm1576_vm3, %v1575_v3, %v4573_v26  ;;  %v1375_v29 = vrot.slane %v4148_v43, 5  ;;  %v1560_v58 = vsel %vm1527_vm2, %v3740_v59, %v4412_v23  ;;  %v5737_v23 = vld [vmem:[#allocation27_spill] sm:$0xff]  ;;  %v3519_v59 = vld [vmem:[%s4073_s10 + $0x18] sm:$0xff]   ;;  %v5741_v18 = vld [vmem:[#allocation13_spill] sm:$0xff] }
 0x128   : > { %v890_v42 = vpop.permute.xlu2 %889  ;;  %v1644_v48 = vsel %vm1642_vm5, %v1611_v8, %v4699_v22  ;;  %v1598_v43 = vsel %vm1576_vm3, %v1560_v58, %v4493_v27  ;;  %v1431_v26 = vpack.c.b16 %v4245_v54, %v4163_v49  ;;  %v3520_v22 = vld [vmem:[%s4073_s10 + $0x20] sm:$0xff]   ;;  %v5739_v49 = vld [vmem:[#allocation6_spill] sm:$0xff] }
 0x129   : > { %v4777_v62 = vsel %vm1675_vm6, %v1646_v19, %v890_v42  ;;  %1075 = vrot.lane.b32.xlu1 %v4500_v33, %s3974_s29  ;;  %1073 = vrot.lane.b32.xlu0 %v4489_v24, %s3974_s29  ;;  %v1272_v19 = vrot.slane %v1256_v40, 7  ;;  %v1536_v40 = vsel %vm1527_vm2, %v3736_v60, %v4342_v17 }
 0x12a   : > { %v1439_v17 = vrot.slane %v1431_v26, 5  ;;  %v5744_v26 = vld [vmem:[#allocation5_spill] sm:$0xff] }
 0x12b   : > { %v820_v47 = vpop.permute.xlu1 %819  ;;  %v4786_v28 = vpop.permute.xlu0 %817  ;;  %v1273_v31 = vsel %vm501_vm0, %v1271_v37, %v1272_v19 }
 0x12e   : > { %1077 = vrot.lane.b32.xlu2 %v4510_v12, %s3974_s29 }
 0x130   : > { %v896_v45 = vpop.permute.xlu2 %895 }
 0x131   : > { %v4803_v25 = vsel %vm1675_vm6, %v1652_v5, %v896_v45  ;;  %1207 = vrot.lane.b32.xlu1 %v1199_v55, %s3968_s11  ;;  %2058 = vrot.lane.b32.xlu0 %v2048_v39, %s3968_s11  ;;  %v1641_v39 = vsel %vm1609_vm4, %v1608_v53, %v4625_v63  ;;  %v1631_v63 = vsel %vm1609_vm4, %v1598_v43, %v4666_v13  ;;  %v4869_v13 = vld [vmem:[%s4073_s10 + $0x228] sm:$0xff]   ;;  %v5742_v53 = vld [vmem:[#allocation29_spill] sm:$0xff] }
 0x132   : > { %v1664_v41 = vsel %vm1642_vm5, %v1631_v63, %v820_v47  ;;  %v1582_v45 = vsel %vm1576_vm3, %v1536_v40, %v5737_v23  ;;  %v3275_v47 = vunpack.c.l.b16 %v3520_v22  ;;  %v5745_v23 = vld [vmem:[#allocation12_spill] sm:$0xff] }
 0x133   : > { %v826_v42 = vpop.permute.xlu1 %825  ;;  %v4811_v2 = vpop.permute.xlu0 %823  ;;  %v1615_v54 = vsel %vm1609_vm4, %v1582_v45, %v4595_v38  ;;  %v1503_v38 = vrot.slane %v4635_v32, 5  ;;  %v5743_v32 = vld [vmem:[#allocation35_spill] sm:$0xff]  ;;  %v5746_v45 = vld [vmem:[#allocation18_spill] sm:$0xff] }
 0x134   : > { %v1670_v15 = vsel %vm1642_vm5, %v1637_v44, %v826_v42  ;;  %v1648_v34 = vsel %vm1642_vm5, %v1615_v54, %v5740_v21  ;;  %v3738_v44 = vld [vmem:[%s4073_s10 + $0xb4] sm:$0xff]  }
 0x135   : > { %v1548_v3 = vsel %vm1527_vm2, %v3738_v44, %v5741_v18  ;;  %v5747_v54 = vld [vmem:[#allocation31_spill] sm:$0xff] }
 0x136   : > { %1295 = vrot.lane.b32.xlu2 %v1271_v37, %s3969_s20 }
 0x138   : > { %v902_v9 = vpop.permute.xlu2 %901 }
 0x139   : > { %v4826_v55 = vsel %vm1675_vm6, %v1658_v16, %v902_v9  ;;  %1359 = vrot.lane.b32.xlu1 %v1351_v0, %s3970_s21  ;;  %1297 = vrot.lane.b32.xlu0 %v1273_v31, %s3969_s20  ;;  %v2049_v31 = vrot.slane %v4869_v13, 6  ;;  %v1258_v9 = vpack.c.b16 %v3275_v47, %v3275_v47  ;;  %v5748_v47 = vld [vmem:[#allocation32_spill] sm:$0xff] }
 0x13b   : > { %v888_v56 = vpop.permute.xlu1 %887  ;;  %v830_v16 = vpop.permute.xlu0 %829 }
 0x13c   : > { %v1677_v35 = vsel %vm1675_vm6, %v1644_v48, %v888_v56  ;;  %v4842_v61 = vsel %vm1642_vm5, %v1641_v39, %v830_v16  ;;  %v1200_v48 = vrot.slane %v3760_v14, 5  ;;  %v1274_v56 = vrot.slane %v3519_v59, 7 }
 0x13d   : > { %v1275_v16 = vrot.slane %v1258_v9, 7 }
 0x13e   : > { %1383 = vrot.lane.b32.xlu2 %v1375_v29, %s3971_s24  ;;  %v1590_v29 = vsel %vm1576_vm3, %v1548_v3, %v5742_v53  ;;  %v5751_v3 = vld [vmem:[#allocation10_spill] sm:$0xff]  ;;  %v3547_v53 = vld [vmem:[%s4073_s10 + $0x238] sm:$0xff]  }
 0x13f   : > { %v1623_v39 = vsel %vm1609_vm4, %v1590_v29, %v5743_v32  ;;  %v3857_v29 = vld [vmem:[%s4073_s10 + $0xf0] sm:$0xff]  }
 0x140   : > { %v908_v5 = vpop.permute.xlu2 %907  ;;  %v1656_v60 = vsel %vm1642_vm5, %v1623_v39, %v4761_v51  ;;  %v5752_v32 = vld [vmem:[#allocation23_spill] sm:$0xff]  ;;  %v5753_v39 = vld [vmem:[#allocation33_spill] sm:$0xff] }
 0x141   : > { %v4860_v27 = vsel %vm1675_vm6, %v1664_v41, %v908_v5  ;;  %1401 = vrot.lane.b32.xlu1 %v5738_v6, %s3972_s27  ;;  %1399 = vrot.lane.b32.xlu0 %v5739_v49, %s3972_s27  ;;  %v1276_v41 = vsel %vm501_vm0, %v1274_v56, %v1275_v16  ;;  %v3856_v5 = vld [vmem:[%s4073_s10 + $0xc8] sm:$0xff]   ;;  %v5754_v16 = vld [vmem:[#allocation8_spill] sm:$0xff] }
 0x142   : > { %v1554_v51 = vsel %vm1527_vm2, %v3856_v5, %v5745_v23 }
 0x143   : > { %v894_v37 = vpop.permute.xlu1 %893  ;;  %v892_v19 = vpop.permute.xlu0 %891 }
 0x144   : > { %v1683_v42 = vsel %vm1675_vm6, %v4733_v46, %v894_v37  ;;  %v4877_v0 = vsel %vm1675_vm6, %v1648_v34, %v892_v19  ;;  %v5749_v34 = vld [vmem:[#allocation37_spill] sm:$0xff] }
 0x145   : > { %v5750_v19 = vld [vmem:[#allocation45_spill] sm:$0xff] }
 0x146   : > { %1447 = vrot.lane.b32.xlu2 %v1439_v17, %s3973_s28 }
 0x148   : > { %v914_v8 = vpop.permute.xlu2 %913 }
 0x149   : > { %v4889_v46 = vsel %vm1675_vm6, %v1670_v15, %v914_v8  ;;  %2060 = vrot.lane.b32.xlu1 %v2049_v31, %s3968_s11  ;;  %1511 = vrot.lane.b32.xlu0 %v1503_v38, %s3974_s29  ;;  %v462_v15 = vpack.c.b16 %v5744_v26, %v5744_v26  ;;  %v1352_v31 = vrot.slane %v3520_v22, 5  ;;  %v1376_v8 = vrot.slane %v5751_v3, 5  ;;  %v3548_v22 = vld [vmem:[%s4073_s10 + $0x240] sm:$0xf]   ;;  %v3005_v3 = vld [vmem:[%s5656_s1 + $0x30] sm:$0xff] }
 0x14a   : > { %v4950_v26 = vunpack.c.h.b16 %v3547_v53  ;;  %v3606_v53 = vld [vmem:[%s4073_s10 + $0x2c] sm:$0xff]  }
 0x14b   : > { %v900_v58 = vpop.permute.xlu1 %899  ;;  %v898_v43 = vpop.permute.xlu0 %897  ;;  %v1557_v6 = vsel %vm1527_vm2, %v462_v15, %v5746_v45  ;;  %v3387_v15 = vunpack.c.l.b16 %v3548_v22 }
 0x14c   : > { %v1689_v63 = vsel %vm1675_vm6, %v1656_v60, %v900_v58  ;;  %v4902_v40 = vsel %vm1675_vm6, %v4679_v57, %v898_v43  ;;  %v1596_v17 = vsel %vm1576_vm3, %v1557_v6, %v5747_v54  ;;  %v1594_v57 = vsel %vm1576_vm3, %v1554_v51, %v5748_v47  ;;  %v3768_v60 = vld [vmem:[%s4073_s10 + $0x1f4] sm:$0xff]   ;;  %v5755_v58 = vld [vmem:[#allocation42_spill] sm:$0xff]  ;;  %v5756_v54 = vld [vmem:[#allocation9_spill] sm:$0xff] }
 0x14d   : > { %v1629_v37 = vsel %vm1609_vm4, %v1596_v17, %v5749_v34  ;;  %v1627_v44 = vsel %vm1609_vm4, %v1594_v57, %v5750_v19  ;;  %v1504_v45 = vrot.slane %v3768_v60, 5  ;;  %v3858_v6 = vld [vmem:[%s4073_s10 + $0x110] sm:$0xff]   ;;  %v2042_v17 = vpack.c.b16 %v3387_v15, %v4950_v26  ;;  %v3006_v34 = vld [vmem:[%s5656_s1 + $0x38] sm:$0xff] }
 0x14e   : > { %1209 = vrot.lane.b32.xlu2 %v1200_v48, %s3968_s11  ;;  %v1660_v38 = vsel %vm1642_vm5, %v1627_v44, %v4691_v1  ;;  %v1662_v14 = vsel %vm1642_vm5, %v1629_v37, %v4786_v28  ;;  %v1566_v1 = vsel %vm1527_vm2, %v3857_v29, %v5752_v32  ;;  %v4965_v47 = vpack.c.b16 %v4670_v4, %v4670_v4  ;;  %v5757_v37 = vld [vmem:[#allocation46_spill] sm:$0xff]  ;;  %v3523_v32 = vld [vmem:[%s4073_s10 + $0x38] sm:$0xf]   ;;  %v5758_v15 = vld [vmem:[#allocation47_spill] sm:$0xff] }
 0x14f   : > { %v1602_v48 = vsel %vm1576_vm3, %v1566_v1, %v5753_v39  ;;  %v1065_v19 = vrot.slane %v5757_v37, 7  ;;  %v2050_v44 = vrot.slane %v2042_v17, 6  ;;  %2443 = vmatpush.bf16.msra.mxu0 %v3006_v34  ;;  %3719 = vmatpush.bf16.msra.mxu3 %v3006_v34  ;;  %v3521_v29 = vld [vmem:[%s4073_s10 + $0x28] sm:$0xff]   ;;  %v3287_v60 = vunpack.c.l.b16 %v3523_v32 }
 0x150   : > { %v984_v49 = vpop.permute.xlu2 %983  ;;  %v1635_v43 = vsel %vm1609_vm4, %v1602_v48, %v5755_v58  ;;  %v1066_v4 = vrot.slane %v4965_v47, 7  ;;  %v3004_v1 = vld [vmem:[%s5656_s1 + $0x28] sm:$0xff]  ;;  %v1201_v39 = vrot.slane %v3521_v29, 5  ;;  %v1277_v48 = vrot.slane %v3606_v53, 7 }
 0x151   : > { %v4916_v21 = vsel %vm1708_vm7, %v1677_v35, %v984_v49  ;;  %1301 = vrot.lane.b32.xlu1 %v1276_v41, %s3969_s20  ;;  %1299 = vrot.lane.b32.xlu0 %v1274_v56, %s3969_s20  ;;  %v1668_v41 = vsel %vm1642_vm5, %v1635_v43, %v4811_v2  ;;  %v1440_v49 = vrot.slane %v3858_v6, 5  ;;  %v3522_v2 = vld [vmem:[%s4073_s10 + $0x30] sm:$0xff]  }
 0x153   : > { %v906_v35 = vpop.permute.xlu1 %905  ;;  %v904_v9 = vpop.permute.xlu0 %903  ;;  %2444 = vmatpush.bf16.msra.mxu0 %v3005_v3  ;;  %3720 = vmatpush.bf16.msra.mxu3 %v3005_v3 }
 0x154   : > { %v1695_v59 = vsel %vm1675_vm6, %v1662_v14, %v906_v35  ;;  %v4930_v18 = vsel %vm1675_vm6, %v1660_v38, %v904_v9 }
 0x156   : > { %1361 = vrot.lane.b32.xlu2 %v1352_v31, %s3970_s21  ;;  %v3284_v31 = vunpack.c.h.b16 %v3522_v2  ;;  %v5760_v2 = vld [vmem:[#allocation44_spill] sm:$0xff] }
 0x157   : > { %2445 = vmatpush.bf16.msra.mxu0 %v3004_v1  ;;  %3721 = vmatpush.bf16.msra.mxu3 %v3004_v1  ;;  %v5763_v1 = vld [vmem:[#allocation28_spill] sm:$0xff] }
 0x158   : > { %v990_v28 = vpop.permute.xlu2 %989  ;;  %v1260_v22 = vpack.c.b16 %v3284_v31, %v3284_v31 }
 0x159   : > { %v4942_v56 = vsel %vm1708_vm7, %v1683_v42, %v990_v28  ;;  %1403 = vrot.lane.b32.xlu1 %v5754_v16, %s3972_s27  ;;  %1385 = vrot.lane.b32.xlu0 %v1376_v8, %s3971_s24  ;;  %v1067_v8 = vsel %vm501_vm0, %v1065_v19, %v1066_v4 }
 0x15a   : > { %v1278_v16 = vrot.slane %v1260_v22, 7 }
 0x15b   : > { %v912_v5 = vpop.permute.xlu1 %911  ;;  %v910_v23 = vpop.permute.xlu0 %909 }
 0x15c   : > { %v4955_v42 = vsel %vm1675_vm6, %v1668_v41, %v912_v5  ;;  %v1699_v51 = vsel %vm1675_vm6, %v4715_v11, %v910_v23  ;;  %v3200_v41 = vunpack.c.h.b16 %v5758_v15  ;;  %v1279_v5 = vsel %vm501_vm0, %v1277_v48, %v1278_v16  ;;  %v3612_v16 = vld [vmem:[%s4073_s10 + $0x1e4] sm:$0xff]  }
 0x15d   : > { %v1345_v23 = vpack.c.b16 %v3287_v60, %v3284_v31  ;;  %v3001_v31 = vld [vmem:[%s5656_s1 + $0x10] sm:$0xff] }
 0x15e   : > { %1405 = vrot.lane.b32.xlu2 %v5756_v54, %s3972_s27  ;;  %v3002_v54 = vld [vmem:[%s5656_s1 + $0x18] sm:$0xff]  ;;  %v5765_v60 = vld [vmem:[#allocation15_spill] sm:$0xff] }
 0x15f   : > { %v1353_v34 = vrot.slane %v1345_v23, 5 }
 0x160   : > { %v996_v57 = vpop.permute.xlu2 %995 }
 0x161   : > { %v4972_v11 = vsel %vm1708_vm7, %v1689_v63, %v996_v57  ;;  %1513 = vrot.lane.b32.xlu1 %v1504_v45, %s3974_s29  ;;  %1449 = vrot.lane.b32.xlu0 %v1440_v49, %s3973_s28  ;;  %v3016_v63 = vld [vmem:[%s5656_s1 + $0x88] sm:$0xff]  ;;  %v5759_v45 = vld [vmem:[#allocation43_spill] sm:$0xff]  ;;  %v1035_v57 = vpack.c.b16 %v5760_v2, %v3200_v41 }
 0x162   : > { %2547 = vmatpush.bf16.msra.mxu2 %v3016_v63  ;;  %v3204_v6 = vunpack.c.h.b16 %v5759_v45  ;;  %v5076_v41 = vld [vmem:[%s4073_s10 + $0x250] sm:$0xff]  }
 0x163   : > { %v918_v38 = vpop.permute.xlu1 %917  ;;  %v916_v14 = vpop.permute.xlu0 %915 }
 0x164   : > { %v4983_v35 = vsel %vm1675_vm6, %v4842_v61, %v918_v38  ;;  %v1705_v9 = vsel %vm1675_vm6, %v4751_v52, %v916_v14  ;;  %v3015_v61 = vld [vmem:[%s5656_s1 + $0x80] sm:$0xff]  ;;  %v1053_v38 = vrot.slane %v1035_v57, 7  ;;  %v5761_v14 = vld [vmem:[#allocation11_spill] sm:$0xff] }
 0x165   : > { %v1377_v63 = vrot.slane %v5761_v14, 5  ;;  %v3012_v14 = vld [vmem:[%s5656_s1 + $0x68] sm:$0xff] }
 0x166   : > { %2062 = vrot.lane.b32.xlu2 %v2050_v44, %s3968_s11  ;;  %2548 = vmatpush.bf16.msra.mxu2 %v3015_v61  ;;  %v1036_v44 = vpack.c.b16 %v3204_v6, %v3204_v6  ;;  %v2999_v61 = vld [vmem:[%s5656_s1] sm:$0xff] }
 0x168   : > { %v1002_v52 = vpop.permute.xlu2 %1001  ;;  %v1054_v3 = vrot.slane %v1036_v44, 7  ;;  %v3525_v44 = vld [vmem:[%s4073_s10 + $0x48] sm:$0xff]  }
 0x169   : > { %v5002_v28 = vsel %vm1708_vm7, %v1695_v59, %v1002_v52  ;;  %1097 = vrot.lane.b32.xlu1 %v1067_v8, %s3974_s29  ;;  %1095 = vrot.lane.b32.xlu0 %v1065_v19, %s3974_s29  ;;  %v3003_v59 = vld [vmem:[%s5656_s1 + $0x20] sm:$0xff]  ;;  %v5762_v52 = vld [vmem:[#allocation14_spill] sm:$0xff] }
 0x16a   : > { %2446 = vmatpush.bf16.msra.mxu0 %v3003_v59  ;;  %3722 = vmatpush.bf16.msra.mxu3 %v3003_v59  ;;  %v1055_v29 = vsel %vm501_vm0, %v1053_v38, %v1054_v3  ;;  %v5073_v59 = vunpack.c.l.b16 %v4728_v7  ;;  %v3013_v7 = vld [vmem:[%s5656_s1 + $0x70] sm:$0xff] }
 0x16b   : > { %v5006_v58 = vpop.permute.xlu1 %987  ;;  %v5008_v43 = vpop.permute.xlu0 %985 }
 0x16e   : > { %1211 = vrot.lane.b32.xlu2 %v1201_v39, %s3968_s11  ;;  %2447 = vmatpush.bf16.msra.mxu0 %v3002_v54  ;;  %v1433_v39 = vpack.c.b16 %v5763_v1, %v5762_v52  ;;  %v3011_v1 = vld [vmem:[%s5656_s1 + $0x60] sm:$0xff] }
 0x16f   : > { %3723 = vmatpush.bf16.msra.mxu3 %v3002_v54 }
 0x170   : > { %v1006_v49 = vpop.permute.xlu2 %1005  ;;  %v1441_v15 = vrot.slane %v1433_v39, 5 }
 0x171   : > { %v5021_v17 = vsel %vm1708_vm7, %v1699_v51, %v1006_v49  ;;  %1305 = vrot.lane.b32.xlu1 %v1279_v5, %s3969_s20  ;;  %1303 = vrot.lane.b32.xlu0 %v1277_v48, %s3969_s20  ;;  %v3541_v5 = vld [vmem:[%s4073_s10 + $0x208] sm:$0xff]  }
 0x172   : > { %2448 = vmatpush.bf16.msra.mxu0 %v3001_v31 }
 0x173   : > { %v994_v37 = vpop.permute.xlu1 %993  ;;  %v992_v19 = vpop.permute.xlu0 %991  ;;  %3724 = vmatpush.bf16.msra.mxu3 %v3001_v31 }
 0x174   : > { %v5028_v4 = vsel %vm1708_vm7, %v4902_v40, %v994_v37  ;;  %v5032_v51 = vsel %vm1708_vm7, %v4803_v25, %v992_v19  ;;  %v3000_v40 = vld [vmem:[%s5656_s1 + $0x8] sm:$0xff]  ;;  %v1505_v37 = vrot.slane %v3541_v5, 5  ;;  %v1046_v19 = vpack.c.b16 %v5073_v59, %v5073_v59 }
 0x176   : > { %1363 = vrot.lane.b32.xlu2 %v1353_v34, %s3970_s21  ;;  %2449 = vmatpush.bf16.msra.mxu0 %v3000_v40  ;;  %v2051_v34 = vrot.slane %v5076_v41, 6 }
 0x177   : > { %3725 = vmatpush.bf16.msra.mxu3 %v3000_v40  ;;  %v1069_v40 = vrot.slane %v1046_v19, 7 }
 0x178   : > { %v1012_v8 = vpop.permute.xlu2 %1011 }
 0x179   : > { %v5043_v25 = vsel %vm1708_vm7, %v1705_v9, %v1012_v8  ;;  %1079 = vrot.lane.b32.xlu1 %v1053_v38, %s3974_s29  ;;  %1387 = vrot.lane.b32.xlu0 %v1377_v63, %s3971_s24  ;;  %v3762_v63 = vld [vmem:[%s4073_s10 + $0x3c] sm:$0xff]   ;;  %v1068_v8 = vrot.slane %v4707_v36, 7 }
 0x17a   : > { %2450 = vmatpush.bf16.msra.mxu0 %v2999_v61  ;;  %v1202_v39 = vrot.slane %v3762_v63, 5  ;;  %v5766_v63 = vld [vmem:[#allocation48_spill] sm:$0xff] }
 0x17b   : > { %v1000_v53 = vpop.permute.xlu1 %999  ;;  %v998_v22 = vpop.permute.xlu0 %997  ;;  %3726 = vmatpush.bf16.msra.mxu3 %v2999_v61 }
 0x17c   : > { %v5050_v32 = vsel %vm1708_vm7, %v4930_v18, %v1000_v53  ;;  %v5054_v9 = vsel %vm1708_vm7, %v4826_v55, %v998_v22  ;;  %v3014_v18 = vld [vmem:[%s5656_s1 + $0x78] sm:$0xff]  ;;  %v5764_v55 = vld [vmem:[#allocation19_spill] sm:$0xff]  ;;  %v3295_v53 = vunpack.c.l.b16 %v3525_v44 }
 0x17d   : > { %2492 = vmatpush.bf16.msra.mxu1 %v3014_v18 }
 0x17e   : > { %1081 = vrot.lane.b32.xlu2 %v1055_v29, %s3974_s29 }
 0x17f   : > { %3727 = vmatpush.bf16.msrb.mxu3 %v3014_v18  ;;  %v1262_v18 = vpack.c.b16 %v3295_v53, %v3295_v53 }
 0x180   : > { %v5062_v48 = vpop.permute.xlu2 %1071 }
 0x181   : > { %1409 = vrot.lane.b32.xlu1 %v5764_v55, %s3972_s27  ;;  %1407 = vrot.lane.b32.xlu0 %v5765_v60, %s3972_s27  ;;  %v5118_v55 = vld [vmem:[%s4073_s10 + $0x1b0] sm:$0xff]   ;;  %v3524_v60 = vld [vmem:[%s4073_s10 + $0x40] sm:$0xff]  }
 0x182   : > { %2493 = vmatpush.bf16.msra.mxu1 %v3013_v7  ;;  %v1280_v5 = vrot.slane %v3524_v60, 7 }
 0x183   : > { %v2055_v23 = vpop.permute.xlu1 %2054  ;;  %v1004_v45 = vpop.permute.xlu0 %1003  ;;  %3728 = vmatpush.bf16.msrb.mxu3 %v3013_v7 }
 0x184   : > { %v2072_v6 = vsel %vm1527_vm2, %v3612_v16, %v2055_v23  ;;  %v2074_v49 = vsel %vm1527_vm2, %v4965_v47, %v2055_v23  ;;  %v5084_v54 = vsel %vm1708_vm7, %v4860_v27, %v1004_v45  ;;  %v1070_v16 = vsel %vm501_vm0, %v1068_v8, %v1069_v40 }
 0x185   : > { %v2126_v2 = vrot.slane %v2072_v6, 7  ;;  %v2127_v57 = vrot.slane %v2074_v49, 7  ;;  %v1281_v23 = vrot.slane %v1262_v18, 7  ;;  %v1743_v40 = vsel %vm1741_vm9, %v4916_v21, %v5062_v48 }
 0x186   : > { %1451 = vrot.lane.b32.xlu2 %v1441_v15, %s3973_s28  ;;  %2494 = vmatpush.bf16.msra.mxu1 %v3012_v14  ;;  %v5129_v15 = vunpack.c.l.b16 %v5118_v55  ;;  %v2183_v60 = vrot.slane %v1743_v40, 3  ;;  %v3610_v40 = vld [vmem:[%s4073_s10 + $0x7c] sm:$0xff]  }
 0x187   : > { %v2189_v47 = vrot.slane %v2126_v2, 3  ;;  %v2128_v27 = vsel %vm501_vm0, %v2126_v2, %v2127_v57  ;;  %3729 = vmatpush.bf16.msrb.mxu3 %v3012_v14  ;;  %v3009_v57 = vld [vmem:[%s5656_s1 + $0x50] sm:$0xff] }
 0x188   : > { %v1078_v31 = vpop.permute.xlu2 %1077  ;;  %v2190_v38 = vrot.slane %v2128_v27, 3  ;;  %v1038_v27 = vpack.c.b16 %v5129_v15, %v5129_v15 }
 0x189   : > { %2064 = vrot.lane.b32.xlu1 %v2051_v34, %s3968_s11  ;;  %1515 = vrot.lane.b32.xlu0 %v1505_v37, %s3974_s29  ;;  %v1749_v53 = vsel %vm1741_vm9, %v4942_v56, %v1078_v31  ;;  %v3007_v31 = vld [vmem:[%s5656_s1 + $0x40] sm:$0xff] }
 0x18a   : > { %v2191_v3 = vsel %vm2182_vm8, %v2189_v47, %v2190_v38  ;;  %2495 = vmatpush.bf16.msra.mxu1 %v3011_v1  ;;  %v1354_v47 = vrot.slane %v3525_v44, 5  ;;  %v1282_v38 = vsel %vm501_vm0, %v1280_v5, %v1281_v23  ;;  %v3008_v44 = vld [vmem:[%s5656_s1 + $0x48] sm:$0xff] }
 0x18b   : > { %2984 = vmatmul.msk.bf16.vlgmr.msra.gmra.mxu2 %vm1576_vm3, %v2191_v3  ;;  %v1010_v22 = vpop.permute.xlu1 %1009  ;;  %v1008_v29 = vpop.permute.xlu0 %1007  ;;  %3730 = vmatpush.bf16.msrb.mxu3 %v3011_v1  ;;  %v1056_v3 = vrot.slane %v5766_v63, 7 }
 0x18c   : > { %v5106_v61 = vsel %vm1708_vm7, %v4889_v46, %v1010_v22  ;;  %v5110_v52 = vsel %vm1708_vm7, %v4955_v42, %v1008_v29  ;;  %v3010_v42 = vld [vmem:[%s5656_s1 + $0x58] sm:$0xff]  ;;  %v3859_v29 = vld [vmem:[%s4073_s10 + $0x12c] sm:$0xff]  }
 0x18d   : > { %v1378_v1 = vrot.slane %v3859_v29, 5  ;;  %v3531_v29 = vld [vmem:[%s4073_s10 + $0x78] sm:$0xff]  }
 0x18e   : > { %1099 = vrot.lane.b32.xlu2 %v1068_v8, %s3974_s29  ;;  %2496 = vmatpush.bf16.msra.mxu1 %v3010_v42  ;;  %v1057_v8 = vrot.slane %v1038_v27, 7  ;;  %v3860_v27 = vld [vmem:[%s4073_s10 + $0x138] sm:$0xff]  }
 0x18f   : > { %3731 = vmatpush.bf16.msrb.mxu3 %v3010_v42 }
 0x190   : > { %v5121_v46 = vpop.permute.xlu2 %1295 }
 0x191   : > { %1213 = vrot.lane.b32.xlu1 %v1202_v39, %s3968_s11  ;;  %1101 = vrot.lane.b32.xlu0 %v1070_v16, %s3974_s29  ;;  %v1714_v39 = vsel %vm1708_vm7, %v4877_v0, %v5006_v58  ;;  %v1712_v16 = vsel %vm1708_vm7, %v4777_v62, %v5008_v43  ;;  %v2193_v0 = vrot.slane %v1749_v53, 3  ;;  %v1058_v62 = vsel %vm501_vm0, %v1056_v3, %v1057_v8  ;;  %v5768_v8 = vld [vmem:[#allocation20_spill] sm:$0xff] }
 0x192   : > { %2497 = vmatpush.bf16.msra.mxu1 %v3009_v57 }
 0x193   : > { %v2057_v45 = vpop.permute.xlu1 %2056  ;;  %v1014_v6 = vpop.permute.xlu0 %1013  ;;  %3732 = vmatpush.bf16.msrb.mxu3 %v3009_v57 }
 0x194   : > { %v2077_v49 = vsel %vm1527_vm2, %v4707_v36, %v2057_v45  ;;  %v2079_v7 = vsel %vm1527_vm2, %v1046_v19, %v2057_v45  ;;  %v5136_v2 = vsel %vm1708_vm7, %v4983_v35, %v1014_v6  ;;  %v3614_v45 = vld [vmem:[%s4073_s10 + $0x20c] sm:$0xff]   ;;  %v2011_v6 = vpack.c.b16 %v4766_v10, %v4766_v10  ;;  %v3532_v10 = vld [vmem:[%s4073_s10 + $0x80] sm:$0xff]  }
 0x195   : > { %v2129_v34 = vrot.slane %v2077_v49, 7  ;;  %v2130_v37 = vrot.slane %v2079_v7, 7  ;;  %v3324_v53 = vunpack.c.h.b16 %v3532_v10 }
 0x196   : > { %1307 = vrot.lane.b32.xlu2 %v1280_v5, %s3969_s20  ;;  %2498 = vmatpush.bf16.msra.mxu1 %v3008_v44 }
 0x197   : > { %v2198_v36 = vrot.slane %v2129_v34, 3  ;;  %v2131_v35 = vsel %vm501_vm0, %v2129_v34, %v2130_v37  ;;  %3733 = vmatpush.bf16.msrb.mxu3 %v3008_v44 }
 0x198   : > { %v5146_v19 = vpop.permute.xlu2 %1383  ;;  %v2199_v14 = vrot.slane %v2131_v35, 3  ;;  %v3770_v35 = vld [vmem:[%s4073_s10 + $0x21c] sm:$0xff]  }
 0x199   : > { %1365 = vrot.lane.b32.xlu1 %v1354_v47, %s3970_s21  ;;  %1309 = vrot.lane.b32.xlu0 %v1282_v38, %s3969_s20  ;;  %v1442_v38 = vrot.slane %v3860_v27, 5  ;;  %v3861_v27 = vld [vmem:[%s4073_s10 + $0x168] sm:$0xff]  }
 0x19a   : > { %v2200_v22 = vsel %vm2182_vm8, %v2198_v36, %v2199_v14  ;;  %2499 = vmatpush.bf16.msra.mxu1 %v3007_v31  ;;  %v5767_v36 = vld [vmem:[#allocation16_spill] sm:$0xff] }
 0x19b   : > { %2985 = vmatmul.msk.bf16.gmra.mxu2 %vm1576_vm3, %v2200_v22  ;;  %v1076_v18 = vpop.permute.xlu1 %1075  ;;  %v1074_v21 = vpop.permute.xlu0 %1073  ;;  %3734 = vmatpush.bf16.msrb.mxu3 %v3007_v31 }
 0x19c   : > { %v1747_v56 = vsel %vm1741_vm9, %v1714_v39, %v1076_v18  ;;  %v1745_v48 = vsel %vm1741_vm9, %v1712_v16, %v1074_v21  ;;  %v1506_v39 = vrot.slane %v3770_v35, 5  ;;  %v1268_v21 = vpack.c.b16 %v3324_v53, %v3324_v53  ;;  %v5771_v35 = vld [vmem:[#allocation22_spill] sm:$0xff] }
 0x19d   : > { %v2192_v58 = vrot.slane %v1747_v56, 3  ;;  %v2184_v42 = vrot.slane %v1745_v48, 3  ;;  %v1289_v56 = vrot.slane %v3610_v40, 7  ;;  %v1205_v48 = vrot.slane %v3531_v29, 5  ;;  %v3544_v29 = vld [vmem:[%s4073_s10 + $0x220] sm:$0xff]  }
 0x19e   : > { %1389 = vrot.lane.b32.xlu2 %v1378_v1, %s3971_s24  ;;  %v3533_v1 = vld [vmem:[%s4073_s10 + $0x88] sm:$0xf]  }
 0x19f   : > { %v2185_v43 = vsel %vm2182_vm8, %v2183_v60, %v2184_v42  ;;  %v2194_v5 = vsel %vm2182_vm8, %v2192_v58, %v2193_v0  ;;  %v3327_v31 = vunpack.c.l.b16 %v3533_v1  ;;  %v1290_v60 = vrot.slane %v1268_v21, 7  ;;  %v5769_v0 = vld [vmem:[#allocation36_spill] sm:$0xff]  ;;  %v5770_v42 = vld [vmem:[#allocation39_spill] sm:$0xff] }
 0x1a0   : > { %v5177_v23 = vpop.permute.xlu2 %1447  ;;  %2451 = vmatmul.bf16.vlgmr.msra.gmra.mxu0 %v2185_v43 }
 0x1a1   : > { %1085 = vrot.lane.b32.xlu1 %v1058_v62, %s3974_s29  ;;  %1083 = vrot.lane.b32.xlu0 %v1056_v3, %s3974_s29 }
 0x1a3   : > { %v1208_v49 = vpop.permute.xlu1 %1207  ;;  %v2059_v7 = vpop.permute.xlu0 %2058 }
 0x1a4   : > { %v2082_v57 = vsel %vm1527_vm2, %v3614_v45, %v2059_v7  ;;  %v2084_v34 = vsel %vm1527_vm2, %v2011_v6, %v2059_v7  ;;  %v1776_v58 = vsel %vm1527_vm2, %v5769_v0, %v1208_v49  ;;  %v1778_v62 = vsel %vm1527_vm2, %v5770_v42, %v1208_v49 }
 0x1a5   : > { %v2132_v37 = vrot.slane %v2082_v57, 7  ;;  %v2133_v47 = vrot.slane %v2084_v34, 7  ;;  %v1349_v6 = vpack.c.b16 %v3327_v31, %v3324_v53  ;;  %v1815_v7 = vsel %vm1576_vm3, %v1776_v58, %v5121_v46 }
 0x1a6   : > { %1411 = vrot.lane.b32.xlu2 %v5767_v36, %s3972_s27  ;;  %v3375_v49 = vunpack.c.l.b16 %v4869_v13  ;;  %v3552_v13 = vld [vmem:[%s4073_s10 + $0x260] sm:$0xff]  }
 0x1a7   : > { %v2207_v14 = vrot.slane %v2132_v37, 3  ;;  %v2134_v44 = vsel %vm501_vm0, %v2132_v37, %v2133_v47  ;;  %v1291_v37 = vsel %vm501_vm0, %v1289_v56, %v1290_v60  ;;  %v1357_v36 = vrot.slane %v1349_v6, 5  ;;  %v3616_v6 = vld [vmem:[%s4073_s10 + $0x234] sm:$0xff]  }
 0x1a8   : > { %v5192_v63 = vpop.permute.xlu2 %1209  ;;  %v2208_v3 = vrot.slane %v2134_v44, 3  ;;  %v5235_v1 = vunpack.c.h.b16 %v3552_v13 }
 0x1a9   : > { %1453 = vrot.lane.b32.xlu1 %v1442_v38, %s3973_s28  ;;  %1413 = vrot.lane.b32.xlu0 %v5768_v8, %s3972_s27  ;;  %v1381_v38 = vrot.slane %v3861_v27, 5 }
 0x1aa   : > { %v2209_v22 = vsel %vm2182_vm8, %v2207_v14, %v2208_v3  ;;  %v5772_v14 = vld [vmem:[#allocation34_spill] sm:$0xff] }
 0x1ab   : > { %v1360_v16 = vpop.permute.xlu1 %1359  ;;  %2986 = vmatmul.msk.bf16.gmra.mxu2 %vm1576_vm3, %v2209_v22  ;;  %v1298_v18 = vpop.permute.xlu0 %1297  ;;  %v1437_v44 = vpack.c.b16 %v5772_v14, %v5771_v35  ;;  %v3553_v3 = vld [vmem:[%s4073_s10 + $0x268] sm:$0xf]   ;;  %v2013_v22 = vpack.c.b16 %v3375_v49, %v3375_v49 }
 0x1ac   : > { %v1817_v45 = vsel %vm1576_vm3, %v1778_v62, %v1298_v18 }
 0x1ad   : > { %v1848_v47 = vsel %vm1609_vm4, %v1817_v45, %v1360_v16 }
 0x1ae   : > { %1517 = vrot.lane.b32.xlu2 %v1506_v39, %s3974_s29  ;;  %v1872_v10 = vsel %vm1642_vm5, %v1848_v47, %v5146_v19 }
 0x1b0   : > { %v5207_v43 = vpop.permute.xlu2 %1361  ;;  %2456 = vmatmul.bf16.gmra.mxu0 %v2194_v5  ;;  %v1847_v5 = vsel %vm1609_vm4, %v1815_v7, %v1360_v16  ;;  %v2015_v7 = vpack.c.b16 %v4950_v26, %v4950_v26  ;;  %v3551_v26 = vld [vmem:[%s4073_s10 + $0x258] sm:$0xff]  }
 0x1b1   : > { %1319 = vrot.lane.b32.xlu1 %v1289_v56, %s3969_s20  ;;  %1219 = vrot.lane.b32.xlu0 %v1205_v48, %s3968_s11  ;;  %v1871_v46 = vsel %vm1642_vm5, %v1847_v5, %v5146_v19  ;;  %v3407_v19 = vunpack.c.l.b16 %v3553_v3  ;;  %v1445_v56 = vrot.slane %v1437_v44, 5  ;;  %v1509_v13 = vrot.slane %v3551_v26, 5 }
 0x1b3   : > { %v1402_v57 = vpop.permute.xlu1 %1401  ;;  %v1400_v34 = vpop.permute.xlu0 %1399 }
 0x1b4   : > { %v1897_v8 = vsel %vm1675_vm6, %v1872_v10, %v1402_v57  ;;  %v1895_v40 = vsel %vm1675_vm6, %v1871_v46, %v1400_v34  ;;  %v2044_v57 = vpack.c.b16 %v3407_v19, %v5235_v1  ;;  %v3526_v10 = vld [vmem:[%s4073_s10 + $0x50] sm:$0xff]   ;;  %v3528_v46 = vld [vmem:[%s4073_s10 + $0x60] sm:$0xf]  }
 0x1b5   : > { %v1927_v16 = vsel %vm1708_vm7, %v1895_v40, %v5177_v23  ;;  %v1928_v18 = vsel %vm1708_vm7, %v1897_v8, %v5177_v23  ;;  %v3527_v23 = vld [vmem:[%s4073_s10 + $0x58] sm:$0xff]   ;;  %v1203_v8 = vrot.slane %v3526_v10, 5  ;;  %v3307_v40 = vunpack.c.l.b16 %v3528_v46 }
 0x1b6   : > { %1321 = vrot.lane.b32.xlu2 %v1291_v37, %s3969_s20  ;;  %v2052_v35 = vrot.slane %v2044_v57, 6 }
 0x1b8   : > { %v5230_v53 = vpop.permute.xlu2 %1405 }
 0x1b9   : > { %1395 = vrot.lane.b32.xlu1 %v1381_v38, %s3971_s24  ;;  %1371 = vrot.lane.b32.xlu0 %v1357_v36, %s3970_s21 }
 0x1bb   : > { %v2061_v39 = vpop.permute.xlu1 %2060  ;;  %v1512_v21 = vpop.permute.xlu0 %1511 }
 0x1bc   : > { %v2087_v48 = vsel %vm1527_vm2, %v3544_v29, %v2061_v39  ;;  %v2089_v31 = vsel %vm1527_vm2, %v2013_v22, %v2061_v39  ;;  %v1951_v60 = vsel %vm1741_vm9, %v1927_v16, %v1512_v21  ;;  %v1952_v0 = vsel %vm1741_vm9, %v1928_v18, %v1512_v21  ;;  %v3608_v22 = vld [vmem:[%s4073_s10 + $0x54] sm:$0xff]  }
 0x1bd   : > { %v2135_v58 = vrot.slane %v2087_v48, 7  ;;  %v2136_v42 = vrot.slane %v2089_v31, 7  ;;  %v2186_v62 = vrot.slane %v1951_v60, 3  ;;  %v2187_v45 = vrot.slane %v1952_v0, 3  ;;  %v5773_v31 = vld [vmem:[#allocation38_spill] sm:$0xff]  ;;  %v5774_v0 = vld [vmem:[#allocation41_spill] sm:$0xff] }
 0x1be   : > { %1423 = vrot.lane.b32.xlu2 %v4472_v30, %s3972_s27  ;;  %v3304_v30 = vunpack.c.h.b16 %v3527_v23  ;;  %v1283_v18 = vrot.slane %v3608_v22, 7  ;;  %v1781_v60 = vsel %vm1527_vm2, %v5773_v31, %v5192_v63 }
 0x1bf   : > { %v2216_v34 = vrot.slane %v2135_v58, 3  ;;  %v2188_v37 = vsel %vm2182_vm8, %v2186_v62, %v2187_v45  ;;  %v2137_v49 = vsel %vm501_vm0, %v2135_v58, %v2136_v42  ;;  %v1783_v58 = vsel %vm1527_vm2, %v5774_v0, %v5192_v63 }
 0x1c0   : > { %v2063_v5 = vpop.permute.xlu2 %2062  ;;  %2500 = vmatmul.bf16.vlgmr.msra.gmra.mxu1 %v2188_v37  ;;  %v2217_v47 = vrot.slane %v2137_v49, 3  ;;  %v1264_v29 = vpack.c.b16 %v3304_v30, %v3304_v30  ;;  %v1347_v39 = vpack.c.b16 %v3307_v40, %v3304_v30 }
 0x1c1   : > { %1459 = vrot.lane.b32.xlu1 %v1445_v56, %s3973_s28  ;;  %1425 = vrot.lane.b32.xlu0 %v4489_v24, %s3972_s27  ;;  %v2092_v27 = vsel %vm1527_vm2, %v3616_v6, %v2063_v5  ;;  %v2094_v38 = vsel %vm1527_vm2, %v2015_v7, %v2063_v5  ;;  %v5272_v56 = vld [vmem:[%s4073_s10 + $0x1c0] sm:$0xff]  }
 0x1c2   : > { %v2218_v36 = vsel %vm2182_vm8, %v2216_v34, %v2217_v47  ;;  %v2138_v3 = vrot.slane %v2092_v27, 7  ;;  %v2139_v24 = vrot.slane %v2094_v38, 7  ;;  %v1284_v21 = vrot.slane %v1264_v29, 7  ;;  %v3863_v27 = vld [vmem:[%s4073_s10 + $0x140] sm:$0xff]  }
 0x1c3   : > { %v1302_v14 = vpop.permute.xlu1 %1301  ;;  %2987 = vmatmul.msk.bf16.gmra.mxu2 %vm1576_vm3, %v2218_v36  ;;  %v1300_v44 = vpop.permute.xlu0 %1299  ;;  %v3224_v48 = vunpack.c.h.b16 %v5272_v56  ;;  %v1355_v57 = vrot.slane %v1347_v39, 5  ;;  %v1379_v38 = vrot.slane %v3863_v27, 5  ;;  %v5775_v36 = vld [vmem:[#allocation40_spill] sm:$0xff] }
 0x1c4   : > { %v2140_v16 = vsel %vm501_vm0, %v2138_v3, %v2139_v24  ;;  %v2225_v45 = vrot.slane %v2138_v3, 3  ;;  %v1821_v6 = vsel %vm1576_vm3, %v1783_v58, %v1302_v14  ;;  %v1819_v7 = vsel %vm1576_vm3, %v1781_v60, %v1300_v44 }
 0x1c5   : > { %v2226_v23 = vrot.slane %v2140_v16, 3  ;;  %v1285_v34 = vsel %vm501_vm0, %v1283_v18, %v1284_v21  ;;  %v1040_v37 = vpack.c.b16 %v3224_v48, %v3224_v48  ;;  %v1850_v49 = vsel %vm1609_vm4, %v1819_v7, %v5207_v43  ;;  %v5776_v16 = vld [vmem:[#allocation17_spill] sm:$0xff] }
 0x1c6   : > { %2066 = vrot.lane.b32.xlu2 %v2052_v35, %s3968_s11  ;;  %v1851_v63 = vsel %vm1609_vm4, %v1821_v6, %v5207_v43  ;;  %v1059_v10 = vrot.slane %v5775_v36, 7  ;;  %v3535_v6 = vld [vmem:[%s4073_s10 + $0x98] sm:$0xff]  }
 0x1c7   : > { %v2227_v30 = vsel %vm2182_vm8, %v2225_v45, %v2226_v23  ;;  %v1060_v46 = vrot.slane %v1040_v37, 7  ;;  %v5778_v45 = vld [vmem:[#allocation21_spill] sm:$0xff]  ;;  %v3546_v23 = vld [vmem:[%s4073_s10 + $0x230] sm:$0xff]  }
 0x1c8   : > { %v5266_v19 = vpop.permute.xlu2 %1211 }
 0x1c9   : > { %1523 = vrot.lane.b32.xlu1 %v1509_v13, %s3974_s29  ;;  %1215 = vrot.lane.b32.xlu0 %v1203_v8, %s3968_s11  ;;  %v1061_v29 = vsel %vm501_vm0, %v1059_v10, %v1060_v46 }
 0x1cb   : > { %v1404_v42 = vpop.permute.xlu1 %1403  ;;  %v1386_v62 = vpop.permute.xlu0 %1385 }
 0x1cc   : > { %v1874_v5 = vsel %vm1642_vm5, %v1850_v49, %v1386_v62  ;;  %v1875_v47 = vsel %vm1642_vm5, %v1851_v63, %v1386_v62  ;;  %v3534_v49 = vld [vmem:[%s4073_s10 + $0x90] sm:$0xff]   ;;  %v1507_v63 = vrot.slane %v3546_v23, 5 }
 0x1cd   : > { %v1899_v43 = vsel %vm1675_vm6, %v1874_v5, %v1404_v42  ;;  %v1901_v14 = vsel %vm1675_vm6, %v1875_v47, %v5230_v53  ;;  %v3774_v23 = vld [vmem:[%s4073_s10 + $0x26c] sm:$0xff]  }
 0x1ce   : > { %1311 = vrot.lane.b32.xlu2 %v1283_v18, %s3969_s20  ;;  %v5777_v18 = vld [vmem:[#allocation30_spill] sm:$0xff] }
 0x1cf   : > { %v1435_v21 = vpack.c.b16 %v5777_v18, %v5776_v16  ;;  %v1358_v18 = vrot.slane %v3535_v6, 5 }
 0x1d0   : > { %v5291_v26 = vpop.permute.xlu2 %1363 }
 0x1d1   : > { %1367 = vrot.lane.b32.xlu1 %v1355_v57, %s3970_s21  ;;  %1313 = vrot.lane.b32.xlu0 %v1285_v34, %s3969_s20  ;;  %v1443_v62 = vrot.slane %v1435_v21, 5  ;;  %v3335_v57 = vunpack.c.l.b16 %v3535_v6  ;;  %v3504_v34 = vld [vmem:[%s4073_s10 + $0x1a0] sm:$0xf]  }
 0x1d2   : > { %v3207_v5 = vunpack.c.l.b16 %v3504_v34  ;;  %v3764_v34 = vld [vmem:[%s4073_s10 + $0x64] sm:$0xff]  }
 0x1d3   : > { %v1514_v35 = vpop.permute.xlu1 %1513  ;;  %v1450_v44 = vpop.permute.xlu0 %1449  ;;  %2988 = vmatmul.msk.bf16.gmra.mxu2 %vm1576_vm3, %v2227_v30  ;;  %v1270_v27 = vpack.c.b16 %v3335_v57, %v3335_v57 }
 0x1d4   : > { %v1930_v13 = vsel %vm1708_vm7, %v1899_v43, %v1450_v44  ;;  %v1931_v3 = vsel %vm1708_vm7, %v1901_v14, %v1450_v44  ;;  %v3864_v14 = vld [vmem:[%s4073_s10 + $0x198] sm:$0xff]  }
 0x1d5   : > { %v1954_v24 = vsel %vm1741_vm9, %v1930_v13, %v1514_v35  ;;  %v1955_v8 = vsel %vm1741_vm9, %v1931_v3, %v1514_v35  ;;  %v1293_v46 = vrot.slane %v1270_v27, 7  ;;  %v1141_v44 = vrot.slane %v3864_v14, 6 }
 0x1d6   : > { %v2195_v40 = vrot.slane %v1954_v24, 3  ;;  %v2196_v22 = vrot.slane %v1955_v8, 3  ;;  %1391 = vrot.lane.b32.xlu2 %v1379_v38, %s3971_s24  ;;  %v1292_v38 = vrot.slane %v3534_v49, 7 }
 0x1d8   : > { %v1082_v39 = vpop.permute.xlu2 %1081  ;;  %v2197_v53 = vsel %vm2182_vm8, %v2195_v40, %v2196_v22  ;;  %v1294_v8 = vsel %vm501_vm0, %v1292_v38, %v1293_v46  ;;  %v3865_v22 = vld [vmem:[%s4073_s10 + $0x17c] sm:$0xff]   ;;  %v1204_v46 = vrot.slane %v3764_v34, 5 }
 0x1d9   : > { %1089 = vrot.lane.b32.xlu1 %v1061_v29, %s3974_s29  ;;  %1087 = vrot.lane.b32.xlu0 %v1059_v10, %s3974_s29  ;;  %v1124_v10 = vpack.c.b16 %v3207_v5, %v3207_v5  ;;  %v1753_v43 = vsel %vm1741_vm9, %v5028_v4, %v1082_v39  ;;  %v1382_v29 = vrot.slane %v3865_v22, 5 }
 0x1da   : > { %2505 = vmatmul.bf16.gmra.mxu1 %v2197_v53  ;;  %v2202_v53 = vrot.slane %v1753_v43, 3 }
 0x1db   : > { %v1098_v48 = vpop.permute.xlu1 %1097  ;;  %v1096_v31 = vpop.permute.xlu0 %1095  ;;  %v1142_v13 = vrot.slane %v1124_v10, 6  ;;  %v1510_v10 = vrot.slane %v3774_v23, 5 }
 0x1dc   : > { %v1769_v60 = vsel %vm1741_vm9, %v5106_v61, %v1098_v48  ;;  %v1767_v0 = vsel %vm1741_vm9, %v5110_v52, %v1096_v31  ;;  %v5779_v61 = vld [vmem:[#allocation25_spill] sm:$0xff]  ;;  %v3766_v52 = vld [vmem:[%s4073_s10 + $0x8c] sm:$0xff]  }
 0x1dd   : > { %v2238_v58 = vrot.slane %v1769_v60, 3  ;;  %v2237_v42 = vrot.slane %v1767_v0, 3  ;;  %v1206_v36 = vrot.slane %v3766_v52, 5  ;;  %v1143_v4 = vsel %vm590_vm1, %v1141_v44, %v1142_v13 }
 0x1de   : > { %1415 = vrot.lane.b32.xlu2 %v5778_v45, %s3972_s27  ;;  %v1788_v48 = vsel %vm1527_vm2, %v1143_v4, %v5266_v19 }
 0x1df   : > { %v2239_v7 = vsel %vm2182_vm8, %v2237_v42, %v2238_v58  ;;  %v3395_v42 = vunpack.c.l.b16 %v5076_v41  ;;  %v5369_v41 = vld [vmem:[%s4073_s10 + $0x278] sm:$0xff]  }
 0x1e0   : > { %v5323_v37 = vpop.permute.xlu2 %1451  ;;  %2481 = vmatmul.bf16.vlgmr.msra.gmra.mxu3 %v2239_v7 }
 0x1e1   : > { %1455 = vrot.lane.b32.xlu1 %v1443_v62, %s3973_s28  ;;  %1417 = vrot.lane.b32.xlu0 %v5779_v61, %s3972_s27  ;;  %v3866_v62 = vld [vmem:[%s4073_s10 + $0x188] sm:$0xff]   ;;  %v3530_v61 = vld [vmem:[%s4073_s10 + $0x70] sm:$0xff]  }
 0x1e2   : > { %v1446_v45 = vrot.slane %v3866_v62, 5 }
 0x1e3   : > { %v1306_v47 = vpop.permute.xlu1 %1305  ;;  %v1304_v30 = vpop.permute.xlu0 %1303 }
 0x1e4   : > { %v1825_v31 = vsel %vm1576_vm3, %v1788_v48, %v1306_v47  ;;  %v2053_v47 = vrot.slane %v5369_v41, 6 }
 0x1e5   : > { %v1854_v7 = vsel %vm1609_vm4, %v1825_v31, %v5291_v26 }
 0x1e6   : > { %1519 = vrot.lane.b32.xlu2 %v1507_v63, %s3974_s29  ;;  %v2017_v63 = vpack.c.b16 %v3395_v42, %v3395_v42 }
 0x1e8   : > { %v5331_v35 = vpop.permute.xlu2 %1099 }
 0x1e9   : > { %1323 = vrot.lane.b32.xlu1 %v1292_v38, %s3969_s20  ;;  %1221 = vrot.lane.b32.xlu0 %v1206_v36, %s3968_s11 }
 0x1eb   : > { %v1080_v3 = vpop.permute.xlu1 %1079  ;;  %v1388_v24 = vpop.permute.xlu0 %1387 }
 0x1ec   : > { %v1751_v40 = vsel %vm1741_vm9, %v5032_v51, %v1080_v3  ;;  %v1786_v51 = vsel %vm1527_vm2, %v1141_v44, %v5266_v19  ;;  %v1878_v57 = vsel %vm1642_vm5, %v1854_v7, %v1388_v24 }
 0x1ed   : > { %v2201_v16 = vrot.slane %v1751_v40, 3  ;;  %v1823_v60 = vsel %vm1576_vm3, %v1786_v51, %v1304_v30  ;;  %v3529_v40 = vld [vmem:[%s4073_s10 + $0x68] sm:$0xff]   ;;  %v1771_v51 = vsel %vm1741_vm9, %v5043_v25, %v5331_v35  ;;  %v1356_v25 = vrot.slane %v3530_v61, 5 }
 0x1ee   : > { %1325 = vrot.lane.b32.xlu2 %v1294_v8, %s3969_s20  ;;  %v1853_v6 = vsel %vm1609_vm4, %v1823_v60, %v5291_v26  ;;  %v3315_v26 = vunpack.c.l.b16 %v3530_v61  ;;  %v2246_v62 = vrot.slane %v1771_v51, 3 }
 0x1ef   : > { %v2203_v39 = vsel %vm2182_vm8, %v2201_v16, %v2202_v53  ;;  %v1877_v19 = vsel %vm1642_vm5, %v1853_v6, %v1388_v24  ;;  %v5393_v16 = vld [vmem:[%s4073_s10 + $0x1d8] sm:$0xff]  }
 0x1f0   : > { %2461 = vmatmul.bf16.gmra.mxu0 %v2203_v39  ;;  %v5345_v21 = vpop.permute.xlu2 %1307  ;;  %v1266_v22 = vpack.c.b16 %v3315_v26, %v3315_v26  ;;  %v1286_v39 = vrot.slane %v3529_v40, 7  ;;  %v5404_v60 = vunpack.c.l.b16 %v5393_v16 }
 0x1f1   : > { %1397 = vrot.lane.b32.xlu1 %v1382_v29, %s3971_s24  ;;  %1373 = vrot.lane.b32.xlu0 %v1358_v18, %s3970_s21 }
 0x1f2   : > { %v1287_v31 = vrot.slane %v1266_v22, 7  ;;  %v1042_v7 = vpack.c.b16 %v5404_v60, %v5404_v60 }
 0x1f3   : > { %v1410_v0 = vpop.permute.xlu1 %1409  ;;  %v1408_v58 = vpop.permute.xlu0 %1407 }
 0x1f4   : > { %v1905_v52 = vsel %vm1675_vm6, %v1878_v57, %v1410_v0  ;;  %v1903_v49 = vsel %vm1675_vm6, %v1877_v19, %v1408_v58  ;;  %v1288_v35 = vsel %vm501_vm0, %v1286_v39, %v1287_v31  ;;  %v5780_v57 = vld [vmem:[#allocation50_spill] sm:$0xff] }
 0x1f5   : > { %v1933_v27 = vsel %vm1708_vm7, %v1903_v49, %v5323_v37  ;;  %v1934_v38 = vsel %vm1708_vm7, %v1905_v52, %v5323_v37  ;;  %v3868_v52 = vld [vmem:[%s4073_s10 + $0x1d0] sm:$0xff]  }
 0x1f6   : > { %1427 = vrot.lane.b32.xlu2 %v4500_v33, %s3972_s27  ;;  %v3549_v33 = vld [vmem:[%s4073_s10 + $0x248] sm:$0xff]   ;;  %v1062_v49 = vrot.slane %v3868_v52, 7 }
 0x1f8   : > { %v5373_v5 = vpop.permute.xlu2 %1389 }
 0x1f9   : > { %1461 = vrot.lane.b32.xlu1 %v1446_v45, %s3973_s28  ;;  %1429 = vrot.lane.b32.xlu0 %v4510_v12, %s3972_s27  ;;  %v3216_v45 = vunpack.c.h.b16 %v5118_v55  ;;  %v3867_v55 = vld [vmem:[%s4073_s10 + $0x154] sm:$0xff]  }
 0x1fa   : > { %v1380_v61 = vrot.slane %v3867_v55, 5 }
 0x1fb   : > { %v2065_v30 = vpop.permute.xlu1 %2064  ;;  %v1516_v36 = vpop.permute.xlu0 %1515  ;;  %v1126_v34 = vpack.c.b16 %v3216_v45, %v3216_v45 }
 0x1fc   : > { %v2097_v43 = vsel %vm1527_vm2, %v3549_v33, %v2065_v30  ;;  %v2099_v12 = vsel %vm1527_vm2, %v2017_v63, %v2065_v30  ;;  %v1957_v14 = vsel %vm1741_vm9, %v1933_v27, %v1516_v36  ;;  %v1958_v44 = vsel %vm1741_vm9, %v1934_v38, %v1516_v36 }
 0x1fd   : > { %v2141_v13 = vrot.slane %v2097_v43, 7  ;;  %v2142_v3 = vrot.slane %v2099_v12, 7  ;;  %v2204_v24 = vrot.slane %v1957_v14, 3  ;;  %v2205_v8 = vrot.slane %v1958_v44, 3  ;;  %v3869_v43 = vld [vmem:[%s4073_s10 + $0x160] sm:$0xff]  }
 0x1fe   : > { %2068 = vrot.lane.b32.xlu2 %v2053_v47, %s3968_s11  ;;  %v1063_v63 = vrot.slane %v1042_v7, 7  ;;  %v1145_v30 = vrot.slane %v1126_v34, 6  ;;  %v1444_v12 = vrot.slane %v3869_v43, 5  ;;  %v3514_v7 = vld [vmem:[%s4073_s10 + $0x1f0] sm:$0xf]  }
 0x1ff   : > { %v2234_v37 = vrot.slane %v2141_v13, 3  ;;  %v2206_v29 = vsel %vm2182_vm8, %v2204_v24, %v2205_v8  ;;  %v2143_v53 = vsel %vm501_vm0, %v2141_v13, %v2142_v3 }
 0x200   : > { %2510 = vmatmul.bf16.gmra.mxu1 %v2206_v29  ;;  %v2235_v18 = vrot.slane %v2143_v53, 3  ;;  %v5395_v4 = vpop.permute.xlu2 %1411  ;;  %v1064_v27 = vsel %vm501_vm0, %v1062_v49, %v1063_v63  ;;  %v3772_v29 = vld [vmem:[%s4073_s10 + $0x244] sm:$0xff]  }
 0x201   : > { %1525 = vrot.lane.b32.xlu1 %v1510_v10, %s3974_s29  ;;  %1217 = vrot.lane.b32.xlu0 %v1204_v46, %s3968_s11 }
 0x202   : > { %v2236_v48 = vsel %vm2182_vm8, %v2234_v37, %v2235_v18  ;;  %v5781_v37 = vld [vmem:[#allocation24_spill] sm:$0xff]  ;;  %v5782_v18 = vld [vmem:[#allocation26_spill] sm:$0xff] }
 0x203   : > { %v1214_v0 = vpop.permute.xlu1 %1213  ;;  %2989 = vmatmul.msk.bf16.gmra.mxu2 %vm1576_vm3, %v2236_v48  ;;  %v1102_v58 = vpop.permute.xlu0 %1101 }
 0x204   : > { %v1773_v42 = vsel %vm1741_vm9, %v5136_v2, %v1102_v58  ;;  %v1125_v2 = vpack.c.b16 %v5129_v15, %v5780_v57 }
 0x205   : > { %v2247_v6 = vrot.slane %v1773_v42, 3 }
 0x206   : > { %1315 = vrot.lane.b32.xlu2 %v1286_v39, %s3969_s20  ;;  %v1144_v47 = vrot.slane %v1125_v2, 6  ;;  %v1508_v39 = vrot.slane %v3772_v29, 5  ;;  %v3247_v2 = vunpack.c.l.b16 %v3514_v7 }
 0x207   : > { %v2248_v23 = vsel %vm2182_vm8, %v2246_v62, %v2247_v6  ;;  %v3618_v6 = vld [vmem:[%s4073_s10 + $0x25c] sm:$0xff]  }
 0x208   : > { %2486 = vmatmul.bf16.gmra.mxu3 %v2248_v23  ;;  %v1518_v19 = vpop.permute.xlu2 %1517  ;;  %v1146_v38 = vsel %vm590_vm1, %v1144_v47, %v1145_v30  ;;  %v1791_v36 = vsel %vm1527_vm2, %v1144_v47, %v1214_v0 }
 0x209   : > { %1369 = vrot.lane.b32.xlu1 %v1356_v25, %s3970_s21  ;;  %1317 = vrot.lane.b32.xlu0 %v1288_v35, %s3969_s20  ;;  %v1793_v14 = vsel %vm1527_vm2, %v1146_v38, %v1214_v0  ;;  %v1827_v44 = vsel %vm1576_vm3, %v1791_v36, %v5345_v21  ;;  %v2019_v25 = vpack.c.b16 %v5235_v1, %v5235_v1  ;;  %s175_s21 = sand.u32 1, %s3942_s13  }
 0x20a   : > { %s2623_s9 = scalar_lea.sflag [#allocation3], %s175_s21 }
 0x20b   : > { %v1366_v33 = vpop.permute.xlu1 %1365  ;;  %v1310_v26 = vpop.permute.xlu0 %1309 }
 0x20c   : > { %v1856_v24 = vsel %vm1609_vm4, %v1827_v44, %v1366_v33  ;;  %v1829_v8 = vsel %vm1576_vm3, %v1793_v14, %v1310_v26 }
 0x20d   : > { %v1857_v21 = vsel %vm1609_vm4, %v1829_v8, %v1366_v33  ;;  %v1132_v33 = vpack.c.b16 %v3247_v2, %v3247_v2 }
 0x20e   : > { %1393 = vrot.lane.b32.xlu2 %v1380_v61, %s3971_s24  ;;  %v1881_v31 = vsel %vm1642_vm5, %v1857_v21, %v5373_v5 }
 0x20f   : > { %v1154_v36 = vrot.slane %v1132_v33, 6 }
 0x210   : > { %v5423_v15 = vpop.permute.xlu2 %1321 }
 0x211   : > { %1093 = vrot.lane.b32.xlu1 %v1064_v27, %s3974_s29  ;;  %1091 = vrot.lane.b32.xlu0 %v1062_v49, %s3974_s29  ;;  %v3870_v27 = vld [vmem:[%s4073_s10 + $0x1e8] sm:$0xff]  }
 0x212   : > { %v1153_v38 = vrot.slane %v3870_v27, 6 }
 0x213   : > { %v1086_v10 = vpop.permute.xlu1 %1085  ;;  %v1084_v46 = vpop.permute.xlu0 %1083 }
 0x214   : > { %v1757_v13 = vsel %vm1741_vm9, %v5054_v9, %v1086_v10  ;;  %v1755_v3 = vsel %vm1741_vm9, %v4972_v11, %v1084_v46  ;;  %v1880_v9 = vsel %vm1642_vm5, %v1856_v24, %v5373_v5  ;;  %v1155_v43 = vsel %vm590_vm1, %v1153_v38, %v1154_v36 }
 0x215   : > { %v2211_v40 = vrot.slane %v1757_v13, 3  ;;  %v2210_v22 = vrot.slane %v1755_v3, 3  ;;  %v1907_v51 = vsel %vm1675_vm6, %v1880_v9, %v5395_v4 }
 0x216   : > { %1419 = vrot.lane.b32.xlu2 %v5781_v37, %s3972_s27 }
 0x217   : > { %v2212_v53 = vsel %vm2182_vm8, %v2210_v22, %v2211_v40 }
 0x218   : > { %2466 = vmatmul.bf16.gmra.mxu0 %v2212_v53  ;;  %v1424_v11 = vpop.permute.xlu2 %1423 }
 0x219   : > { %1457 = vrot.lane.b32.xlu1 %v1444_v12, %s3973_s28  ;;  %1421 = vrot.lane.b32.xlu0 %v5782_v18, %s3972_s27  ;;  %s2739_s27 = sshll.u32 %s175_s21, 6 }
 0x21a   : > { %s5510_s28 = scalar_lea.vmem [#allocation2], %s2739_s27 }
 0x21b   : > { %v1454_v48 = vpop.permute.xlu1 %1453  ;;  %v1414_v0 = vpop.permute.xlu0 %1413 }
 0x21c   : > { %v1936_v58 = vsel %vm1708_vm7, %v1907_v51, %v1454_v48  ;;  %v1909_v42 = vsel %vm1675_vm6, %v1881_v31, %v1414_v0 }
 0x21d   : > { %v1960_v62 = vsel %vm1741_vm9, %v1936_v58, %v1518_v19  ;;  %v1937_v45 = vsel %vm1708_vm7, %v1909_v42, %v1454_v48  ;;  %v2452_v37 = vpop.f32.mrf.mxu0  ;;  %v2550_v42 = vpop.f32.mrf.mxu2 }
 0x21e   : > { %v2213_v35 = vrot.slane %v1960_v62, 3  ;;  %v1961_v4 = vsel %vm1741_vm9, %v1937_v45, %v1518_v19  ;;  %1521 = vrot.lane.b32.xlu2 %v1508_v39, %s3974_s29  ;;  %v3509_v39 = vld [vmem:[%s4073_s10 + $0x1c8] sm:$0xf]   ;;  %s2994_s29 = sshll.u32 %s3954_s16, 5 }
 0x21f   : > { %v2214_v5 = vrot.slane %v1961_v4, 3 }
 0x220   : > { %v2067_v23 = vpop.permute.xlu2 %2066 }
 0x221   : > { %v2215_v57 = vsel %vm2182_vm8, %v2213_v35, %v2214_v5  ;;  %v2102_v34 = vsel %vm1527_vm2, %v3618_v6, %v2067_v23  ;;  %v2104_v55 = vsel %vm1527_vm2, %v2019_v25, %v2067_v23  ;;  %v3227_v6 = vunpack.c.l.b16 %v3509_v39 }
 0x222   : > { %2515 = vmatmul.bf16.gmra.mxu1 %v2215_v57  ;;  %v2144_v61 = vrot.slane %v2102_v34, 7  ;;  %v2145_v52 = vrot.slane %v2104_v55, 7 }
 0x223   : > { %v1320_v1 = vpop.permute.xlu1 %1319  ;;  %v1220_v49 = vpop.permute.xlu0 %1219  ;;  %v1128_v5 = vpack.c.b16 %v3227_v6, %v3227_v6 }
 0x224   : > { %v2243_v63 = vrot.slane %v2144_v61, 3  ;;  %v2146_v19 = vsel %vm501_vm0, %v2144_v61, %v2145_v52  ;;  %v1806_v12 = vsel %vm1527_vm2, %v1153_v38, %v1220_v49  ;;  %v1808_v14 = vsel %vm1527_vm2, %v1155_v43, %v1220_v49 }
 0x225   : > { %v2244_v26 = vrot.slane %v2146_v19, 3  ;;  %v1839_v13 = vsel %vm1576_vm3, %v1806_v12, %v1320_v1  ;;  %v1841_v3 = vsel %vm1576_vm3, %v1808_v14, %v5423_v15  ;;  %v2454_v7 = vpop.f32.mrf.mxu0  ;;  %v1147_v61 = vrot.slane %v5272_v56, 6 }
 0x226   : > { %v1148_v52 = vrot.slane %v1128_v5, 6 }
 0x227   : > { %v2245_v47 = vsel %vm2182_vm8, %v2243_v63, %v2244_v26  ;;  %v2552_v63 = vpop.f32.mrf.mxu2 }
 0x228   : > { %v5468_v30 = vpop.permute.xlu2 %1311  ;;  %2990 = vmatmul.msk.bf16.gmra.mxu2 %vm1576_vm3, %v2245_v47  ;;  %v1149_v47 = vsel %vm590_vm1, %v1147_v61, %v1148_v52 }
 0x22b   : > { %v1396_v10 = vpop.permute.xlu1 %1395  ;;  %v1372_v46 = vpop.permute.xlu0 %1371 }
 0x22c   : > { %v1865_v40 = vsel %vm1609_vm4, %v1839_v13, %v1372_v46  ;;  %v1866_v22 = vsel %vm1609_vm4, %v1841_v3, %v1372_v46 }
 0x22d   : > { %v1889_v29 = vsel %vm1642_vm5, %v1865_v40, %v1396_v10  ;;  %v1890_v53 = vsel %vm1642_vm5, %v1866_v22, %v1396_v10  ;;  %v2457_v40 = vpop.f32.mrf.mxu0 }
 0x22e   : > { %v1919_v18 = vsel %vm1675_vm6, %v1889_v29, %v1424_v11  ;;  %v5494_v11 = vld [vmem:[%s5657_s2] ss:$0 sm:$0xff] }
 0x22f   : > { %v2453_v23 = vadd.f32 %v5494_v11, %v2452_v37  ;;  %v2455_v34 = vadd.f32 %v5494_v11, %v2454_v7 }
 0x230   : > { %v5475_v44 = vpop.permute.xlu2 %1391 }
 0x233   : > { %v1460_v24 = vpop.permute.xlu1 %1459  ;;  %v1426_v8 = vpop.permute.xlu0 %1425 }
 0x234   : > { %v1921_v21 = vsel %vm1675_vm6, %v1890_v53, %v1426_v8  ;;  %v1945_v51 = vsel %vm1708_vm7, %v1919_v18, %v1460_v24 }
 0x235   : > { %v1946_v48 = vsel %vm1708_vm7, %v1921_v21, %v1460_v24  ;;  %v2459_v7 = vpop.f32.mrf.mxu0 }
 0x238   : > { %v1416_v9 = vpop.permute.xlu2 %1415 }
 0x23b   : > { %v1524_v15 = vpop.permute.xlu1 %1523  ;;  %v1216_v31 = vpop.permute.xlu0 %1215 }
 0x23c   : > { %v1969_v0 = vsel %vm1741_vm9, %v1945_v51, %v1524_v15  ;;  %v1970_v58 = vsel %vm1741_vm9, %v1946_v48, %v1524_v15  ;;  %v1796_v27 = vsel %vm1527_vm2, %v1147_v61, %v1216_v31  ;;  %v1798_v46 = vsel %vm1527_vm2, %v1149_v47, %v1216_v31 }
 0x23d   : > { %v2240_v62 = vrot.slane %v1969_v0, 3  ;;  %v2241_v45 = vrot.slane %v1970_v58, 3  ;;  %v2501_v25 = vpop.f32.mrf.mxu1  ;;  %v1831_v56 = vsel %vm1576_vm3, %v1796_v27, %v5468_v30  ;;  %v3554_v0 = vld [vmem:[%s4073_s10 + $0x270] sm:$0xff]   ;;  %v1133_v61 = vpack.c.b16 %v5073_v59, %v4721_v50 }
 0x23e   : > { %v2502_v55 = vadd.f32 %v2501_v25, %v2453_v23 }
 0x23f   : > { %v2242_v35 = vsel %vm2182_vm8, %v2240_v62, %v2241_v45  ;;  %v3871_v45 = vld [vmem:[%s4073_s10 + $0x200] sm:$0xff]   ;;  %s2993_s10 = sshll.u32 %s3950_s15, 4  ;;  %s2637_s15 = sshll.u32 %s5510_s28, 4  ;;  %s2638_s15 = int_to_ptr.vmem [resolvable:$true] %s2637_s15 }
 0x240   : > { %2530 = vmatmul.bf16.vlgmr.msrb.gmra.mxu3 %v2242_v35  ;;  %v1520_v4 = vpop.permute.xlu2 %1519  ;;  %v2551_v19 = vadd.f32 %v2550_v42, %v2502_v55  ;;  %v3256_v6 = vunpack.c.h.b16 %v3871_v45  ;;  %s2634_s4 = sadd.s32 %s2994_s29, %s2993_s10  ;;  %s3892_s29 = scalar_lea.hbm %s5658_s3, 256 }
 0x241   : > { %s2995_s5 = sshll.u32 %s2634_s4, 2 }
 0x242   : > { %v1134_v52 = vpack.c.b16 %v3256_v6, %v3256_v6  ;;  %s2636_s8 = scalar_lea.hbm %s5658_s3, %s2995_s5 }
 0x243   : > { %v1368_v57 = vpop.permute.xlu1 %1367  ;;  %v1314_v2 = vpop.permute.xlu0 %1313  ;;  %s2639_s16 = sshll.u32 %s2636_s8, 4  ;;  %s2640_s16 = int_to_ptr.hbm [resolvable:$true] %s2639_s16 }
 0x244   : > { %v1859_v14 = vsel %vm1609_vm4, %v1831_v56, %v1368_v57  ;;  %v1833_v13 = vsel %vm1576_vm3, %v1798_v46, %v1314_v2  ;;  %s3886_s11 = sshra.s32 %s2640_s16, 4  ;;  %s3887_s11 = int_to_ptr.hbm [resolvable:$true] %s3886_s11 }
 0x245   : > { %v2503_v1 = vpop.f32.mrf.mxu1  ;;  %v1860_v30 = vsel %vm1609_vm4, %v1833_v13, %v1368_v57  ;;  %v1883_v22 = vsel %vm1642_vm5, %v1859_v14, %v5475_v44  ;;  %s3888_s20 = scalar_lea.hbm %s3887_s11, 64  ;;  %p3893_p2 = scmp.lt.s32.totalorder %s3887_s11, %s5658_s3 }
 0x246   : > { %v2504_v49 = vadd.f32 %v2503_v1, %v2455_v34  ;;  %v1911_v37 = vsel %vm1675_vm6, %v1883_v22, %v1416_v9  ;;  %v1884_v53 = vsel %vm1642_vm5, %v1860_v30, %v5475_v44  ;;  %v2555_v9 = vpop.f32.mrf.mxu2  ;;  %p3889_p13 = scmp.ne.s32.totalorder %s3887_s11, %s3888_s20  ;;  %p3894_p4 = scmp.lt.s32.totalorder %s3892_s29, %s3888_s20 }
 0x248   : > { %v2553_v33 = vadd.f32 %v2552_v63, %v2504_v49  ;;  %v5503_v26 = vpop.permute.xlu2 %1325  ;;  %v2460_v49 = vadd.f32 %v5494_v11, %v2459_v7  ;;  %p3890_p0 = pnand %p3889_p13, %p4047_p3  ;;  %p3895_p5 = por %p3894_p4, %p3893_p2 }
 0x24a   : > { %v3420_v38 = vpack.c.bf16 %v2553_v33, %v2551_v19  ;;  %p3891_p1 = pneg %p3890_p0 }
 0x24b   : > { %v1090_v36 = vpop.permute.xlu1 %1089  ;;  %v1088_v10 = vpop.permute.xlu0 %1087 }
 0x24c   : > { %3421 = vst [vmem:[%s5510_s28] sm:$0xff] %v3420_v38   ;;  %v1761_v43 = vsel %vm1741_vm9, %v5002_v28, %v1090_v36  ;;  %v1759_v12 = vsel %vm1741_vm9, %v5050_v32, %v1088_v10  ;;  %v3415_v32 = vunpack.c.l.b16 %v5369_v41  ;;  %v1156_v38 = vrot.slane %v1133_v61, 6  ;;  %p3896_p6 = pnand %p3895_p5, %p3891_p1 }
 0x24d   : > { %v2220_v3 = vrot.slane %v1761_v43, 3  ;;  %v2219_v24 = vrot.slane %v1759_v12, 3  ;;  %v1157_v36 = vrot.slane %v1134_v52, 6 }
 0x24e   : > { %v2021_v48 = vpack.c.b16 %v3415_v32, %v3415_v32  ;;  %v2557_v27 = vpop.f32.mrf.mxu2 }
 0x24f   : > { %v2221_v8 = vsel %vm2182_vm8, %v2219_v24, %v2220_v3  ;;  %v1158_v59 = vsel %vm590_vm1, %v1156_v38, %v1157_v36 }
 0x250   : > { %2471 = vmatmul.bf16.gmra.mxu0 %v2221_v8  ;;  %v5523_v28 = vpop.permute.xlu2 %1427 }
 0x253   : > { %v1456_v29 = vpop.permute.xlu1 %1455  ;;  %v1418_v21 = vpop.permute.xlu0 %1417 }
 0x254   : > { %v1939_v18 = vsel %vm1708_vm7, %v1911_v37, %v1456_v29  ;;  %v1913_v39 = vsel %vm1675_vm6, %v1884_v53, %v1418_v21 }
 0x255   : > { %v1963_v51 = vsel %vm1741_vm9, %v1939_v18, %v1520_v4  ;;  %v1940_v15 = vsel %vm1708_vm7, %v1913_v39, %v1456_v29 }
 0x256   : > { %v2222_v31 = vrot.slane %v1963_v51, 3  ;;  %v1964_v41 = vsel %vm1741_vm9, %v1940_v15, %v1520_v4  ;;  %v2458_v4 = vadd.f32 %v5494_v11, %v2457_v40 }
 0x257   : > { %v2506_v58 = vpop.f32.mrf.mxu1  ;;  %v2223_v42 = vrot.slane %v1964_v41, 3  ;;  %v3236_v41 = vunpack.c.h.b16 %v5393_v16 }
 0x258   : > { %v2069_v62 = vpop.permute.xlu2 %2068  ;;  %v2507_v63 = vadd.f32 %v2506_v58, %v2458_v4  ;;  %v2560_v58 = vpop.f32.mrf.mxu2 }
 0x259   : > { %v2224_v44 = vsel %vm2182_vm8, %v2222_v31, %v2223_v42  ;;  %v2107_v25 = vsel %vm1527_vm2, %v3554_v0, %v2069_v62  ;;  %v2109_v35 = vsel %vm1527_vm2, %v2021_v48, %v2069_v62  ;;  %v1130_v62 = vpack.c.b16 %v3236_v41, %v3236_v41 }
 0x25a   : > { %2520 = vmatmul.bf16.gmra.mxu1 %v2224_v44  ;;  %v2147_v5 = vrot.slane %v2107_v25, 7  ;;  %v2148_v23 = vrot.slane %v2109_v35, 7  ;;  %v2556_v10 = vadd.f32 %v2555_v9, %v2507_v63 }
 0x25b   : > { %v1324_v57 = vpop.permute.xlu1 %1323  ;;  %v1222_v2 = vpop.permute.xlu0 %1221  ;;  %v1151_v35 = vrot.slane %v1130_v62, 6 }
 0x25c   : > { %v2252_v34 = vrot.slane %v2147_v5, 3  ;;  %v2149_v55 = vsel %vm501_vm0, %v2147_v5, %v2148_v23  ;;  %v1811_v12 = vsel %vm1527_vm2, %v1156_v38, %v1222_v2  ;;  %v1813_v14 = vsel %vm1527_vm2, %v1158_v59, %v1222_v2 }
 0x25d   : > { %v2253_v1 = vrot.slane %v2149_v55, 3  ;;  %v1843_v13 = vsel %vm1576_vm3, %v1811_v12, %v1324_v57  ;;  %v1845_v3 = vsel %vm1576_vm3, %v1813_v14, %v5503_v26 }
 0x25f   : > { %v2508_v19 = vpop.f32.mrf.mxu1  ;;  %v2254_v33 = vsel %vm2182_vm8, %v2252_v34, %v2253_v1 }
 0x260   : > { %v2509_v47 = vadd.f32 %v2508_v19, %v2460_v49  ;;  %2991 = vmatmul.msk.bf16.gmra.mxu2 %vm1576_vm3, %v2254_v33  ;;  %v1316_v22 = vpop.permute.xlu2 %1315  ;;  %v2562_v23 = vpop.f32.mrf.mxu2 }
 0x262   : > { %v2558_v46 = vadd.f32 %v2557_v27, %v2509_v47 }
 0x263   : > { %v1398_v56 = vpop.permute.xlu1 %1397  ;;  %v1374_v50 = vpop.permute.xlu0 %1373 }
 0x264   : > { %v3425_v43 = vpack.c.bf16 %v2558_v46, %v2556_v10  ;;  %v1868_v8 = vsel %vm1609_vm4, %v1843_v13, %v1374_v50  ;;  %v1869_v40 = vsel %vm1609_vm4, %v1845_v3, %v1374_v50 }
 0x265   : > { %v1892_v32 = vsel %vm1642_vm5, %v1868_v8, %v1398_v56  ;;  %v1893_v37 = vsel %vm1642_vm5, %v1869_v40, %v1398_v56 }
 0x266   : > { %3596 = vst [vmem:[%s5510_s28 + $0x8] sm:$0xff] %v3425_v43   ;;  %v1923_v53 = vsel %vm1675_vm6, %v1892_v32, %v5523_v28  ;;  %v1129_v28 = vpack.c.b16 %v5404_v60, %v4689_v20 }
 0x268   : > { %v1394_v42 = vpop.permute.xlu2 %1393  ;;  %v1150_v6 = vrot.slane %v1129_v28, 6  ;;  %v2565_v56 = vpop.f32.mrf.mxu2 }
 0x26a   : > { %v1152_v57 = vsel %vm590_vm1, %v1150_v6, %v1151_v35 }
 0x26b   : > { %v1462_v24 = vpop.permute.xlu1 %1461  ;;  %v1430_v30 = vpop.permute.xlu0 %1429 }
 0x26c   : > { %v1925_v29 = vsel %vm1675_vm6, %v1893_v37, %v1430_v30  ;;  %v1948_v21 = vsel %vm1708_vm7, %v1923_v53, %v1462_v24 }
 0x26d   : > { %v1949_v26 = vsel %vm1708_vm7, %v1925_v29, %v1462_v24  ;;  %v2462_v0 = vpop.f32.mrf.mxu0 }
 0x26e   : > { %v2463_v16 = vadd.f32 %v5494_v11, %v2462_v0 }
 0x270   : > { %v1420_v2 = vpop.permute.xlu2 %1419  ;;  %v2567_v37 = vpop.f32.mrf.mxu2 }
 0x273   : > { %v1526_v18 = vpop.permute.xlu1 %1525  ;;  %v1218_v15 = vpop.permute.xlu0 %1217 }
 0x274   : > { %v1972_v39 = vsel %vm1741_vm9, %v1948_v21, %v1526_v18  ;;  %v1973_v51 = vsel %vm1741_vm9, %v1949_v26, %v1526_v18  ;;  %v1801_v7 = vsel %vm1527_vm2, %v1150_v6, %v1218_v15  ;;  %v1803_v52 = vsel %vm1527_vm2, %v1152_v57, %v1218_v15  ;;  %v2482_v21 = vpop.f32.mrf.mxu3 }
 0x275   : > { %v2249_v48 = vrot.slane %v1972_v39, 3  ;;  %v2250_v31 = vrot.slane %v1973_v51, 3  ;;  %v2464_v5 = vpop.f32.mrf.mxu0  ;;  %v1835_v20 = vsel %vm1576_vm3, %v1801_v7, %v1316_v22  ;;  %v2483_v35 = vadd.f32 %v5494_v11, %v2482_v21 }
 0x276   : > { %v2465_v34 = vadd.f32 %v5494_v11, %v2464_v5 }
 0x277   : > { %v2251_v9 = vsel %vm2182_vm8, %v2249_v48, %v2250_v31 }
 0x278   : > { %2535 = vmatmul.bf16.gmra.mxu3 %v2251_v9  ;;  %v1522_v50 = vpop.permute.xlu2 %1521  ;;  %v2570_v53 = vpop.f32.mrf.mxu2 }
 0x27b   : > { %v1370_v44 = vpop.permute.xlu1 %1369  ;;  %v1318_v45 = vpop.permute.xlu0 %1317 }
 0x27c   : > { %v1862_v1 = vsel %vm1609_vm4, %v1835_v20, %v1370_v44  ;;  %v1837_v33 = vsel %vm1576_vm3, %v1803_v52, %v1318_v45  ;;  %v2484_v0 = vpop.f32.mrf.mxu3 }
 0x27d   : > { %v2511_v25 = vpop.f32.mrf.mxu1  ;;  %v1886_v38 = vsel %vm1642_vm5, %v1862_v1, %v1394_v42  ;;  %v1863_v46 = vsel %vm1609_vm4, %v1837_v33, %v1370_v44  ;;  %v2485_v7 = vadd.f32 %v5494_v11, %v2484_v0 }
 0x27e   : > { %v2512_v60 = vadd.f32 %v2511_v25, %v2463_v16  ;;  %v1887_v14 = vsel %vm1642_vm5, %v1863_v46, %v1394_v42 }
 0x280   : > { %v2561_v36 = vadd.f32 %v2560_v58, %v2512_v60  ;;  %v2572_v41 = vpop.f32.mrf.mxu2 }
 0x283   : > { %v1094_v4 = vpop.permute.xlu1 %1093  ;;  %v1092_v61 = vpop.permute.xlu0 %1091 }
 0x284   : > { %v1765_v55 = vsel %vm1741_vm9, %v5021_v17, %v1094_v4  ;;  %v1763_v63 = vsel %vm1741_vm9, %v5084_v54, %v1092_v61  ;;  %v1915_v54 = vsel %vm1675_vm6, %v1886_v38, %v1420_v2 }
 0x285   : > { %v2229_v49 = vrot.slane %v1765_v55, 3  ;;  %v2513_v19 = vpop.f32.mrf.mxu1  ;;  %v2228_v47 = vrot.slane %v1763_v63, 3 }
 0x286   : > { %v2514_v27 = vadd.f32 %v2513_v19, %v2465_v34 }
 0x287   : > { %v2230_v17 = vsel %vm2182_vm8, %v2228_v47, %v2229_v49 }
 0x288   : > { %v2563_v10 = vadd.f32 %v2562_v23, %v2514_v27  ;;  %2476 = vmatmul.bf16.gmra.mxu0 %v2230_v17  ;;  %v2575_v28 = vpop.f32.mrf.mxu2 }
 0x28a   : > { %v3430_v43 = vpack.c.bf16 %v2563_v10, %v2561_v36 }
 0x28b   : > { %v1458_v59 = vpop.permute.xlu1 %1457  ;;  %v1422_v13 = vpop.permute.xlu0 %1421 }
 0x28c   : > { %3597 = vst [vmem:[%s5510_s28 + $0x10] sm:$0xff] %v3430_v43   ;;  %v1942_v12 = vsel %vm1708_vm7, %v1915_v54, %v1458_v59  ;;  %v1917_v3 = vsel %vm1675_vm6, %v1887_v14, %v1422_v13  ;;  %v2487_v62 = vpop.f32.mrf.mxu3 }
 0x28d   : > { %v1966_v24 = vsel %vm1741_vm9, %v1942_v12, %v1522_v50  ;;  %v1943_v8 = vsel %vm1708_vm7, %v1917_v3, %v1458_v59  ;;  %v2488_v36 = vadd.f32 %v5494_v11, %v2487_v62 }
 0x28e   : > { %v2231_v40 = vrot.slane %v1966_v24, 3  ;;  %v1967_v30 = vsel %vm1741_vm9, %v1943_v8, %v1522_v50 }
 0x28f   : > { %v2232_v22 = vrot.slane %v1967_v30, 3 }
 0x290   : > { %v2577_v44 = vpop.f32.mrf.mxu2 }
 0x291   : > { %v2233_v32 = vsel %vm2182_vm8, %v2231_v40, %v2232_v22 }
 0x292   : > { %2525 = vmatmul.bf16.gmra.mxu1 %v2233_v32 }
 0x294   : > { %v2489_v45 = vpop.f32.mrf.mxu3 }
 0x295   : > { %v2467_v29 = vpop.f32.mrf.mxu0  ;;  %v2490_v10 = vadd.f32 %v5494_v11, %v2489_v45 }
 0x296   : > { %v2468_v39 = vadd.f32 %v5494_v11, %v2467_v29 }
 0x29d   : > { %v2469_v26 = vpop.f32.mrf.mxu0 }
 0x29e   : > { %v2470_v51 = vadd.f32 %v5494_v11, %v2469_v26 }
 0x29f   : > { %v2516_v18 = vpop.f32.mrf.mxu1 }
 0x2a0   : > { %v2517_v15 = vadd.f32 %v2516_v18, %v2468_v39 }
 0x2a2   : > { %v2566_v9 = vadd.f32 %v2565_v56, %v2517_v15 }
 0x2a7   : > { %v2518_v48 = vpop.f32.mrf.mxu1 }
 0x2a8   : > { %v2519_v31 = vadd.f32 %v2518_v48, %v2470_v51 }
 0x2aa   : > { %v2568_v58 = vadd.f32 %v2567_v37, %v2519_v31 }
 0x2ab   : > { %v2580_v6 = vpop.f32.mrf.mxu2 }
 0x2ac   : > { %v3435_v42 = vpack.c.bf16 %v2568_v58, %v2566_v9 }
 0x2ae   : > { %3598 = vst [vmem:[%s5510_s28 + $0x18] sm:$0xff] %v3435_v42  }
 0x2b3   : > { %v2582_v57 = vpop.f32.mrf.mxu2 }
 0x2c3   : > { %v2531_v25 = vpop.f32.mrf.mxu3 }
 0x2c4   : > { %v2532_v5 = vadd.f32 %v2531_v25, %v2483_v35 }
 0x2c6   : > { %v2581_v2 = vadd.f32 %v2580_v6, %v2532_v5 }
 0x2cb   : > { %v2533_v23 = vpop.f32.mrf.mxu3 }
 0x2cc   : > { %v2534_v16 = vadd.f32 %v2533_v23, %v2485_v7 }
 0x2cd   : > { %v2472_v20 = vpop.f32.mrf.mxu0 }
 0x2ce   : > { %v2583_v4 = vadd.f32 %v2582_v57, %v2534_v16  ;;  %v2473_v61 = vadd.f32 %v5494_v11, %v2472_v20 }
 0x2d0   : > { %v3450_v34 = vpack.c.bf16 %v2583_v4, %v2581_v2 }
 0x2d2   : > { %3601 = vst [vmem:[%s5510_s28 + $0x30] sm:$0xff] %v3450_v34  }
 0x2d5   : > { %v2474_v55 = vpop.f32.mrf.mxu0 }
 0x2d6   : > { %v2475_v52 = vadd.f32 %v5494_v11, %v2474_v55 }
 0x2d7   : > { %v2521_v60 = vpop.f32.mrf.mxu1 }
 0x2d8   : > { %v2522_v1 = vadd.f32 %v2521_v60, %v2473_v61 }
 0x2da   : > { %v2571_v19 = vadd.f32 %v2570_v53, %v2522_v1 }
 0x2df   : > { %v2523_v49 = vpop.f32.mrf.mxu1 }
 0x2e0   : > { %v2524_v63 = vadd.f32 %v2523_v49, %v2475_v52 }
 0x2e2   : > { %v2573_v33 = vadd.f32 %v2572_v41, %v2524_v63 }
 0x2e3   : > { %v2585_v27 = vpop.f32.mrf.mxu2 }
 0x2e4   : > { %v3440_v47 = vpack.c.bf16 %v2573_v33, %v2571_v19 }
 0x2e6   : > { %3599 = vst [vmem:[%s5510_s28 + $0x20] sm:$0xff] %v3440_v47  }
 0x2eb   : > { %v2587_v43 = vpop.f32.mrf.mxu2 }
 0x2fb   : > { %v2536_v38 = vpop.f32.mrf.mxu3 }
 0x2fc   : > { %v2537_v17 = vadd.f32 %v2536_v38, %v2488_v36 }
 0x2fe   : > { %v2586_v50 = vadd.f32 %v2585_v27, %v2537_v17 }
 0x303   : > { %v2538_v46 = vpop.f32.mrf.mxu3 }
 0x304   : > { %v2539_v56 = vadd.f32 %v2538_v46, %v2490_v10 }
 0x305   : > { %v2477_v12 = vpop.f32.mrf.mxu0 }
 0x306   : > { %v2588_v54 = vadd.f32 %v2587_v43, %v2539_v56  ;;  %v2478_v3 = vadd.f32 %v5494_v11, %v2477_v12 }
 0x308   : > { %v3455_v59 = vpack.c.bf16 %v2588_v54, %v2586_v50 }
 0x30a   : > { %3602 = vst [vmem:[%s5510_s28 + $0x38] sm:$0xff] %v3455_v59  }
 0x30d   : > { %v2479_v13 = vpop.f32.mrf.mxu0 }
 0x30e   : > { %v2480_v24 = vadd.f32 %v5494_v11, %v2479_v13 }
 0x30f   : > { %v2526_v14 = vpop.f32.mrf.mxu1 }
 0x310   : > { %v2527_v8 = vadd.f32 %v2526_v14, %v2478_v3 }
 0x312   : > { %v2576_v22 = vadd.f32 %v2575_v28, %v2527_v8 }
 0x317   : > { %v2528_v40 = vpop.f32.mrf.mxu1 }
 0x318   : > { %v2529_v30 = vadd.f32 %v2528_v40, %v2480_v24 }
 0x31a   : > { %v2578_v32 = vadd.f32 %v2577_v44, %v2529_v30 }
 0x31c   : > { %v3445_v37 = vpack.c.bf16 %v2578_v32, %v2576_v22 }
 0x31e   : > { %3600 = vst [vmem:[%s5510_s28 + $0x28] sm:$0xff] %v3445_v37  }
 0x31f   : > { %3899 = shalt.err (!%p3896_p6)
}
 0x320   : > { %s3975_s21 = smov 4  }
 0x321   : > { %3776 = dma.vmem_to_hbm [thread:$0]  (%p4047_p3), %s2638_s15, 1024, %s2640_s16, %s2623_s9, %s3971_s24, %s3971_s24, %s3975_s21  }
 0x322 PF: > { %p3782_p7 = scmp.ge.s32.totalorder %s3966_s19, 2  ;;  %s2654_s28 = sand.u32 1, %s3938_s12  }
 0x323   : > { %s2655_s6 = scalar_lea.sflag [#allocation3], %s2654_s28 }
 0x324   : > { %p3779_p9 = pnand %p3782_p7, %p4056_p8 }
 0x326   : > { %p3780_p10 = pneg %p3779_p9 }
 0x328   : > { %3933 = dma.done.wait (%p3780_p10), %s2655_s6, 1024  }
 0x329   : > { %3935 = vsyncadd (%p3780_p10), %s2655_s6, 4294966272  ;;  %s16_s19 = sadd.s32 1, %s3966_s19   ;;  %s5783_s12 = smov %s3942_s13 }
 0x32a   : > { %p13_p11 = scmp.ge.s32.totalorder %s16_s19, 6   ;;  %s5784_s13 = smov %s3946_s14 }
 0x32b   : > { %s5785_s14 = smov %s4065_s30  ;;  %s5786_s15 = smov %s3958_s17 }
 0x32c   : > { %s5787_s16 = smov %s3962_s18  ;;  %s5788_s17 = smov %s5791_s22 }
 0x32d   : > { %s5789_s18 = smov %s5795_s23  ;;  %15 = sbr.rel (!%p13_p11) target bundleno = 5 (0x5), region = 72 }
 0x332   :  { %2661 = vsyncpa [#allocation3], 1 }
 0x333   :  { %2663 = vsyncpa [#allocation3 + $0x1], 1 }

</bundles_post_ra>
